<compile_context>
chip_gen: v6e
topology: v6e:2x2x1
jax: 0.10.0
libtpu: 0.0.40
codegen_flags: <defaults>
</compile_context>

<pallas_src>
import jax
import jax.numpy as jnp
from jax.experimental import pallas as pl
from jax.experimental.pallas import tpu as pltpu


def rec_nn_kernel(x_ref, wbd_ref, whh_ref, brep_ref,
                  w1_ref, b1_ref, w2_ref, b2_ref,
                  out_ref, xg_scr):
    """LSTM over time (one batch tile) + 2-layer MLP head.

    x_ref:    (tn, L*F)       lane-dense flat time series
    wbd_ref:  (L*F, L*4Hp)    block-diagonal, gate-padded input projection
    whh_ref:  (Hp, 4Hp)       recurrent weights, gate order [i|f|o|g]
    brep_ref: (1, L*4Hp)      (b_ih + b_hh) tiled per timestep
    xg_scr:   (tn, L*4Hp)     VMEM scratch for the hoisted projection
    """
    tn = x_ref.shape[0]
    Hp = whh_ref.shape[0]
    G = 4 * Hp
    H3 = 3 * Hp
    L = xg_scr.shape[1] // G

    # ---- hoisted input projection: one fused K = L*F matmul, off the serial path ----
    xg_scr[...] = (jnp.dot(x_ref[...], wbd_ref[...],
                           preferred_element_type=jnp.float32)
                   + brep_ref[...])

    whh = whh_ref[...]
    w1 = w1_ref[...]
    b1 = b1_ref[...]
    w2 = w2_ref[...]
    b2 = b2_ref[...]

    # ---- recurrence, sub-chunked over rows to bound live vreg pressure ----
    RC = 128
    for r0 in range(0, tn, RC):
        rc = min(RC, tn - r0)
        h = jnp.zeros((rc, Hp), jnp.float32)          # PyTorch default: h0 = c0 = 0
        c = jnp.zeros((rc, Hp), jnp.float32)
        for t in range(L):                            # static trip count (L small)
            gates = (xg_scr[r0:r0 + rc, t * G:(t + 1) * G]
                     + jnp.dot(h, whh, preferred_element_type=jnp.float32))
            sig = jax.nn.sigmoid(gates[:, :H3])       # [i|f|o] in one contiguous EUP pass
            i_g = sig[:, 0:Hp]
            f_g = sig[:, Hp:2 * Hp]
            o_g = sig[:, 2 * Hp:H3]
            g_g = jnp.tanh(gates[:, H3:G])
            c = f_g * c + i_g * g_g
            h = o_g * jnp.tanh(c)

        # ---- MLP head: Linear(H, H1) -> ReLU -> Linear(H1, O) ----
        z1 = jnp.maximum(
            jnp.dot(h, w1, preferred_element_type=jnp.float32) + b1, 0.0)
        out = jnp.dot(z1, w2, preferred_element_type=jnp.float32) + b2
        out_ref[r0:r0 + rc, :] = out.astype(out_ref.dtype)


def init_params(key, in_features=16, hidden=20, lin_hidden=20, out_features=4):
    """Deterministic init mimicking PyTorch's uniform(-1/sqrt(fan), 1/sqrt(fan))."""
    ks = jax.random.split(key, 8)
    k_lstm = 1.0 / jnp.sqrt(hidden)
    w_ih = jax.random.uniform(ks[0], (4 * hidden, in_features),
                              minval=-k_lstm, maxval=k_lstm, dtype=jnp.float32)
    w_hh = jax.random.uniform(ks[1], (4 * hidden, hidden),
                              minval=-k_lstm, maxval=k_lstm, dtype=jnp.float32)
    b_ih = jax.random.uniform(ks[2], (4 * hidden,),
                              minval=-k_lstm, maxval=k_lstm, dtype=jnp.float32)
    b_hh = jax.random.uniform(ks[3], (4 * hidden,),
                              minval=-k_lstm, maxval=k_lstm, dtype=jnp.float32)
    k1 = 1.0 / jnp.sqrt(hidden)
    w1 = jax.random.uniform(ks[4], (lin_hidden, hidden),
                            minval=-k1, maxval=k1, dtype=jnp.float32)
    b1 = jax.random.uniform(ks[5], (lin_hidden,),
                            minval=-k1, maxval=k1, dtype=jnp.float32)
    k2 = 1.0 / jnp.sqrt(lin_hidden)
    w2 = jax.random.uniform(ks[6], (out_features, lin_hidden),
                            minval=-k2, maxval=k2, dtype=jnp.float32)
    b2 = jax.random.uniform(ks[7], (out_features,),
                            minval=-k2, maxval=k2, dtype=jnp.float32)
    return dict(w_ih=w_ih, w_hh=w_hh, b_ih=b_ih, b_hh=b_hh,
                w1=w1, b1=b1, w2=w2, b2=b2)


def _pack_params(params, Hp, L):
    """Transpose to (in, out), reorder gates [i|f|g|o]->[i|f|o|g], zero-pad H->Hp,
    and build the block-diagonal input-projection matrix."""
    H = params["w_hh"].shape[1]
    H1 = params["w1"].shape[0]
    O = params["w2"].shape[0]
    G = 4 * Hp

    def pad_block(blk):                       # (rows, H) -> (rows, Hp), zero-padded
        return jnp.pad(blk, ((0, 0), (0, Hp - H)))

    def pad_and_reorder(w):                   # (rows, 4H) [i|f|g|o] -> (rows, 4Hp) [i|f|o|g]
        r = w.shape[0]
        g4 = w.reshape(r, 4, H)
        return jnp.concatenate(
            [pad_block(g4[:, 0]), pad_block(g4[:, 1]),
             pad_block(g4[:, 3]), pad_block(g4[:, 2])], axis=-1)

    wih_p = pad_and_reorder(params["w_ih"].T)                     # (F, 4Hp)
    F = wih_p.shape[0]

    # Block-diagonal projection (L*F, L*4Hp): column block t = Wih for timestep t.
    wbd = jnp.zeros((L * F, L * G), jnp.float32)
    for t in range(L):
        wbd = wbd.at[t * F:(t + 1) * F, t * G:(t + 1) * G].set(wih_p)

    whh_p = pad_and_reorder(params["w_hh"].T)                     # (H, 4Hp)
    whh_p = jnp.pad(whh_p, ((0, Hp - H), (0, 0)))                 # (Hp, 4Hp)

    b_p = pad_and_reorder((params["b_ih"] + params["b_hh"]).reshape(1, 4 * H))  # (1, 4Hp)
    b_rep = jnp.tile(b_p, (1, L))                                 # (1, L*4Hp)

    w1_p = jnp.pad(params["w1"].T, ((0, Hp - H), (0, 0)))         # (Hp, H1)
    b1 = params["b1"].reshape(1, H1)
    w2_p = params["w2"].T                                         # (H1, O)
    b2 = params["b2"].reshape(1, O)
    return wbd, whh_p, b_rep, w1_p, b1, w2_p, b2


def _round_up(a, b):
    return ((a + b - 1) // b) * b


def rec_nn_forward(x_flat, params, in_features=16, batch_tile=1024):
    """x_flat: (N, L * in_features)  ->  (N, out_features)."""
    N, LF = x_flat.shape
    F = in_features
    assert LF % F == 0
    L = LF // F
    H = params["w_hh"].shape[1]
    H1 = params["w1"].shape[0]
    O = params["w2"].shape[0]
    Hp = _round_up(H, 32)                    # 4*Hp is a multiple of 128 lanes
    G = 4 * Hp

    # Batch tiling (x stays lane-dense (N, L*F); no transpose / repack in HBM):
    #  * small N -> one full block (grid collapses to a single step)
    #  * large N -> >= 4 grid steps so v7x's two TensorCores both get work,
    #    capped by batch_tile; per-step VMEM is budgeted explicitly below.
    if N <= 64:
        tn = N
    else:
        tn = min(batch_tile, _round_up(pl.cdiv(N, 4), 8))
    n_pad = _round_up(N, tn)
    if n_pad != N:
        x_flat = jnp.pad(x_flat, ((0, n_pad - N), (0, 0)))
    grid = (n_pad // tn,)

    wbd, whh_p, b_rep, w1_p, b1, w2_p, b2 = _pack_params(params, Hp, L)

    # Per-grid-step VMEM: double-buffered x & out blocks + xg scratch + resident weights.
    vmem_bytes = 4 * (2 * tn * L * F + tn * L * G + 2 * tn * O
                      + (L * F) * (L * G) + L * G + Hp * G + G
                      + Hp * H1 + H1 + H1 * O + O)
    vmem_limit = int(min(100 * 1024 * 1024, max(32 * 1024 * 1024, 2 * vmem_bytes)))

    vmem = pl.BlockSpec(memory_space=pltpu.MemorySpace.VMEM)      # weights fully resident
    out = pl.pallas_call(
        rec_nn_kernel,
        out_shape=jax.ShapeDtypeStruct((n_pad, O), jnp.float32),
        grid=grid,
        in_specs=[pl.BlockSpec((tn, L * F), lambda i: (i, 0)),    # lane-dense x batch tile
                  vmem, vmem, vmem, vmem, vmem, vmem, vmem],
        out_specs=pl.BlockSpec((tn, O), lambda i: (i, 0)),
        scratch_shapes=[pltpu.VMEM((tn, L * G), jnp.float32)],    # hoisted x-projection
        compiler_params=pltpu.CompilerParams(
            dimension_semantics=("parallel",),
            vmem_limit_bytes=vmem_limit),
    )(x_flat, wbd, whh_p, b_rep, w1_p, b1, w2_p, b2)
    return out[:N]


def rec_nn_reference(x_flat, params, in_features=16):
    """Pure-JAX reference mirroring torch.nn.LSTM + Sequential head."""
    N = x_flat.shape[0]
    x = x_flat.reshape(N, -1, in_features)
    H = params["w_hh"].shape[1]
    h = jnp.zeros((N, H), jnp.float32)
    c = jnp.zeros((N, H), jnp.float32)
    wih_t = params["w_ih"].T
    whh_t = params["w_hh"].T
    b = params["b_ih"] + params["b_hh"]
    for t in range(x.shape[1]):
        gates = x[:, t, :] @ wih_t + h @ whh_t + b
        i_g = jax.nn.sigmoid(gates[:, 0:H])
        f_g = jax.nn.sigmoid(gates[:, H:2 * H])
        g_g = jnp.tanh(gates[:, 2 * H:3 * H])
        o_g = jax.nn.sigmoid(gates[:, 3 * H:4 * H])
        c = f_g * c + i_g * g_g
        h = o_g * jnp.tanh(c)
    z1 = jnp.maximum(h @ params["w1"].T + params["b1"], 0.0)
    return z1 @ params["w2"].T + params["b2"]


if __name__ == "__main__":
    IN_FEATURES = 16
    OUT_FEATURES = 4
    HIDDEN = 20
    LIN_HIDDEN = 20
    N = 2
    L = 8

    key = jax.random.PRNGKey(0)
    k_params, k_x = jax.random.split(key)
    params = init_params(k_params, IN_FEATURES, HIDDEN, LIN_HIDDEN, OUT_FEATURES)
    # Input matches the PyTorch forward contract: (N, C*L) flat time series.
    x_flat = jax.random.normal(k_x, (N, L * IN_FEATURES), dtype=jnp.float32)

    out = rec_nn_forward(x_flat, params, in_features=IN_FEATURES)
    out = jax.block_until_ready(out)

    ref = rec_nn_reference(x_flat, params, in_features=IN_FEATURES)
    assert out.shape == (N, OUT_FEATURES)
    assert jnp.allclose(out, ref, atol=2e-3, rtol=2e-3)

    print("KERNEL_OK")
</pallas_src>

<mosaic_0001>
module attributes {stable_mosaic.version = 11 : i64} {
  func.func @rec_nn_kernel(%arg0: i32, %arg1: memref<2x128xf32, #tpu.memory_space<vmem>>, %arg2: memref<128x1024xf32, #tpu.memory_space<vmem>>, %arg3: memref<32x128xf32, #tpu.memory_space<vmem>>, %arg4: memref<1x1024xf32, #tpu.memory_space<vmem>>, %arg5: memref<32x20xf32, #tpu.memory_space<vmem>>, %arg6: memref<1x20xf32, #tpu.memory_space<vmem>>, %arg7: memref<20x4xf32, #tpu.memory_space<vmem>>, %arg8: memref<1x4xf32, #tpu.memory_space<vmem>>, %arg9: memref<2x4xf32, #tpu.memory_space<vmem>>, %arg10: memref<2x1024xf32, #tpu.memory_space<vmem>>) attributes {dimension_semantics = [#tpu.dimension_semantics<parallel>], iteration_bounds = array<i64: 1>, scalar_prefetch = 0 : i64, scratch_operands = 1 : i64, tpu.core_type = #tpu.core_type<tc>, window_params = [{transform_indices = @transform_0, window_bounds = array<i64: 2, 128>}, {pipeline_mode = #tpu.pipeline_mode<synchronous>, transform_indices = @transform_1, window_bounds = array<i64: 128, 1024>}, {pipeline_mode = #tpu.pipeline_mode<synchronous>, transform_indices = @transform_2, window_bounds = array<i64: 32, 128>}, {pipeline_mode = #tpu.pipeline_mode<synchronous>, transform_indices = @transform_3, window_bounds = array<i64: 1, 1024>}, {pipeline_mode = #tpu.pipeline_mode<synchronous>, transform_indices = @transform_4, window_bounds = array<i64: 32, 20>}, {pipeline_mode = #tpu.pipeline_mode<synchronous>, transform_indices = @transform_5, window_bounds = array<i64: 1, 20>}, {pipeline_mode = #tpu.pipeline_mode<synchronous>, transform_indices = @transform_6, window_bounds = array<i64: 20, 4>}, {pipeline_mode = #tpu.pipeline_mode<synchronous>, transform_indices = @transform_7, window_bounds = array<i64: 1, 4>}, {transform_indices = @transform_8, window_bounds = array<i64: 2, 4>}]} {
    %c0 = arith.constant 0 : index
    %c0_0 = arith.constant 0 : index
    %0 = vector.load %arg1[%c0, %c0_0] : memref<2x128xf32, #tpu.memory_space<vmem>>, vector<2x128xf32>
    %c0_1 = arith.constant 0 : index
    %c0_2 = arith.constant 0 : index
    %1 = vector.load %arg2[%c0_1, %c0_2] : memref<128x1024xf32, #tpu.memory_space<vmem>>, vector<128x1024xf32>
    %cst = arith.constant dense<0.000000e+00> : vector<2x1024xf32>
    %2 = tpu.matmul %0, %1, %cst {dimension_numbers = #tpu.dot_dimension_numbers<[1], [0], [0], [1], [0, 0, 1, 1], [], []>} : vector<2x128xf32>, vector<128x1024xf32>, vector<2x1024xf32> -> vector<2x1024xf32>
    %c0_3 = arith.constant 0 : index
    %c0_4 = arith.constant 0 : index
    %3 = vector.load %arg4[%c0_3, %c0_4] : memref<1x1024xf32, #tpu.memory_space<vmem>>, vector<1x1024xf32>
    %4 = vector.broadcast %3 : vector<1x1024xf32> to vector<2x1024xf32>
    %5 = arith.addf %2, %4 : vector<2x1024xf32>
    %c0_5 = arith.constant 0 : index
    %c0_6 = arith.constant 0 : index
    %6 = vector.load %arg10[%c0_5, %c0_6] : memref<2x1024xf32, #tpu.memory_space<vmem>>, vector<2x1024xf32>
    tpu.vector_store %arg10[%c0_5, %c0_6], %5 {strides = array<i32>} : memref<2x1024xf32, #tpu.memory_space<vmem>>, vector<2x1024xf32>,
    %c0_7 = arith.constant 0 : index
    %c0_8 = arith.constant 0 : index
    %7 = vector.load %arg3[%c0_7, %c0_8] : memref<32x128xf32, #tpu.memory_space<vmem>>, vector<32x128xf32>
    %c0_9 = arith.constant 0 : index
    %c0_10 = arith.constant 0 : index
    %8 = vector.load %arg5[%c0_9, %c0_10] : memref<32x20xf32, #tpu.memory_space<vmem>>, vector<32x20xf32>
    %c0_11 = arith.constant 0 : index
    %c0_12 = arith.constant 0 : index
    %9 = vector.load %arg6[%c0_11, %c0_12] : memref<1x20xf32, #tpu.memory_space<vmem>>, vector<1x20xf32>
    %c0_13 = arith.constant 0 : index
    %c0_14 = arith.constant 0 : index
    %10 = vector.load %arg7[%c0_13, %c0_14] : memref<20x4xf32, #tpu.memory_space<vmem>>, vector<20x4xf32>
    %c0_15 = arith.constant 0 : index
    %c0_16 = arith.constant 0 : index
    %11 = vector.load %arg8[%c0_15, %c0_16] : memref<1x4xf32, #tpu.memory_space<vmem>>, vector<1x4xf32>
    %cst_17 = arith.constant 0.000000e+00 : f32
    %12 = vector.broadcast %cst_17 : f32 to vector<2x32xf32>
    %cst_18 = arith.constant 0.000000e+00 : f32
    %13 = vector.broadcast %cst_18 : f32 to vector<2x32xf32>
    %c0_19 = arith.constant 0 : index
    %c0_20 = arith.constant 0 : index
    %14 = vector.load %arg10[%c0_19, %c0_20] : memref<2x1024xf32, #tpu.memory_space<vmem>>, vector<2x128xf32>
    %cst_21 = arith.constant dense<0.000000e+00> : vector<2x128xf32>
    %15 = tpu.matmul %12, %7, %cst_21 {dimension_numbers = #tpu.dot_dimension_numbers<[1], [0], [0], [1], [0, 0, 1, 1], [], []>} : vector<2x32xf32>, vector<32x128xf32>, vector<2x128xf32> -> vector<2x128xf32>
    %16 = arith.addf %14, %15 : vector<2x128xf32>
    %17 = vector.extract_strided_slice %16 {offsets = [0, 0], sizes = [2, 96], strides = [1, 1]} : vector<2x128xf32> to vector<2x96xf32>
    %18 = arith.negf %17 : vector<2x96xf32>
    %19 = math.exp %18 : vector<2x96xf32>
    %cst_22 = arith.constant 1.000000e+00 : f32
    %20 = vector.broadcast %cst_22 : f32 to vector<2x96xf32>
    %21 = arith.addf %20, %19 : vector<2x96xf32>
    %22 = arith.divf %20, %21 : vector<2x96xf32>
    %23 = vector.extract_strided_slice %22 {offsets = [0, 0], sizes = [2, 32], strides = [1, 1]} : vector<2x96xf32> to vector<2x32xf32>
    %24 = vector.extract_strided_slice %22 {offsets = [0, 32], sizes = [2, 32], strides = [1, 1]} : vector<2x96xf32> to vector<2x32xf32>
    %25 = vector.extract_strided_slice %22 {offsets = [0, 64], sizes = [2, 32], strides = [1, 1]} : vector<2x96xf32> to vector<2x32xf32>
    %26 = vector.extract_strided_slice %16 {offsets = [0, 96], sizes = [2, 32], strides = [1, 1]} : vector<2x128xf32> to vector<2x32xf32>
    %27 = math.tanh %26 : vector<2x32xf32>
    %28 = arith.mulf %24, %13 : vector<2x32xf32>
    %29 = arith.mulf %23, %27 : vector<2x32xf32>
    %30 = arith.addf %28, %29 : vector<2x32xf32>
    %31 = math.tanh %30 : vector<2x32xf32>
    %32 = arith.mulf %25, %31 : vector<2x32xf32>
    %c0_23 = arith.constant 0 : index
    %c128 = arith.constant 128 : index
    %33 = vector.load %arg10[%c0_23, %c128] : memref<2x1024xf32, #tpu.memory_space<vmem>>, vector<2x128xf32>
    %cst_24 = arith.constant dense<0.000000e+00> : vector<2x128xf32>
    %34 = tpu.matmul %32, %7, %cst_24 {dimension_numbers = #tpu.dot_dimension_numbers<[1], [0], [0], [1], [0, 0, 1, 1], [], []>} : vector<2x32xf32>, vector<32x128xf32>, vector<2x128xf32> -> vector<2x128xf32>
    %35 = arith.addf %33, %34 : vector<2x128xf32>
    %36 = vector.extract_strided_slice %35 {offsets = [0, 0], sizes = [2, 96], strides = [1, 1]} : vector<2x128xf32> to vector<2x96xf32>
    %37 = arith.negf %36 : vector<2x96xf32>
    %38 = math.exp %37 : vector<2x96xf32>
    %cst_25 = arith.constant 1.000000e+00 : f32
    %39 = vector.broadcast %cst_25 : f32 to vector<2x96xf32>
    %40 = arith.addf %39, %38 : vector<2x96xf32>
    %41 = arith.divf %39, %40 : vector<2x96xf32>
    %42 = vector.extract_strided_slice %41 {offsets = [0, 0], sizes = [2, 32], strides = [1, 1]} : vector<2x96xf32> to vector<2x32xf32>
    %43 = vector.extract_strided_slice %41 {offsets = [0, 32], sizes = [2, 32], strides = [1, 1]} : vector<2x96xf32> to vector<2x32xf32>
    %44 = vector.extract_strided_slice %41 {offsets = [0, 64], sizes = [2, 32], strides = [1, 1]} : vector<2x96xf32> to vector<2x32xf32>
    %45 = vector.extract_strided_slice %35 {offsets = [0, 96], sizes = [2, 32], strides = [1, 1]} : vector<2x128xf32> to vector<2x32xf32>
    %46 = math.tanh %45 : vector<2x32xf32>
    %47 = arith.mulf %43, %30 : vector<2x32xf32>
    %48 = arith.mulf %42, %46 : vector<2x32xf32>
    %49 = arith.addf %47, %48 : vector<2x32xf32>
    %50 = math.tanh %49 : vector<2x32xf32>
    %51 = arith.mulf %44, %50 : vector<2x32xf32>
    %c0_26 = arith.constant 0 : index
    %c256 = arith.constant 256 : index
    %52 = vector.load %arg10[%c0_26, %c256] : memref<2x1024xf32, #tpu.memory_space<vmem>>, vector<2x128xf32>
    %cst_27 = arith.constant dense<0.000000e+00> : vector<2x128xf32>
    %53 = tpu.matmul %51, %7, %cst_27 {dimension_numbers = #tpu.dot_dimension_numbers<[1], [0], [0], [1], [0, 0, 1, 1], [], []>} : vector<2x32xf32>, vector<32x128xf32>, vector<2x128xf32> -> vector<2x128xf32>
    %54 = arith.addf %52, %53 : vector<2x128xf32>
    %55 = vector.extract_strided_slice %54 {offsets = [0, 0], sizes = [2, 96], strides = [1, 1]} : vector<2x128xf32> to vector<2x96xf32>
    %56 = arith.negf %55 : vector<2x96xf32>
    %57 = math.exp %56 : vector<2x96xf32>
    %cst_28 = arith.constant 1.000000e+00 : f32
    %58 = vector.broadcast %cst_28 : f32 to vector<2x96xf32>
    %59 = arith.addf %58, %57 : vector<2x96xf32>
    %60 = arith.divf %58, %59 : vector<2x96xf32>
    %61 = vector.extract_strided_slice %60 {offsets = [0, 0], sizes = [2, 32], strides = [1, 1]} : vector<2x96xf32> to vector<2x32xf32>
    %62 = vector.extract_strided_slice %60 {offsets = [0, 32], sizes = [2, 32], strides = [1, 1]} : vector<2x96xf32> to vector<2x32xf32>
    %63 = vector.extract_strided_slice %60 {offsets = [0, 64], sizes = [2, 32], strides = [1, 1]} : vector<2x96xf32> to vector<2x32xf32>
    %64 = vector.extract_strided_slice %54 {offsets = [0, 96], sizes = [2, 32], strides = [1, 1]} : vector<2x128xf32> to vector<2x32xf32>
    %65 = math.tanh %64 : vector<2x32xf32>
    %66 = arith.mulf %62, %49 : vector<2x32xf32>
    %67 = arith.mulf %61, %65 : vector<2x32xf32>
    %68 = arith.addf %66, %67 : vector<2x32xf32>
    %69 = math.tanh %68 : vector<2x32xf32>
    %70 = arith.mulf %63, %69 : vector<2x32xf32>
    %c0_29 = arith.constant 0 : index
    %c384 = arith.constant 384 : index
    %71 = vector.load %arg10[%c0_29, %c384] : memref<2x1024xf32, #tpu.memory_space<vmem>>, vector<2x128xf32>
    %cst_30 = arith.constant dense<0.000000e+00> : vector<2x128xf32>
    %72 = tpu.matmul %70, %7, %cst_30 {dimension_numbers = #tpu.dot_dimension_numbers<[1], [0], [0], [1], [0, 0, 1, 1], [], []>} : vector<2x32xf32>, vector<32x128xf32>, vector<2x128xf32> -> vector<2x128xf32>
    %73 = arith.addf %71, %72 : vector<2x128xf32>
    %74 = vector.extract_strided_slice %73 {offsets = [0, 0], sizes = [2, 96], strides = [1, 1]} : vector<2x128xf32> to vector<2x96xf32>
    %75 = arith.negf %74 : vector<2x96xf32>
    %76 = math.exp %75 : vector<2x96xf32>
    %cst_31 = arith.constant 1.000000e+00 : f32
    %77 = vector.broadcast %cst_31 : f32 to vector<2x96xf32>
    %78 = arith.addf %77, %76 : vector<2x96xf32>
    %79 = arith.divf %77, %78 : vector<2x96xf32>
    %80 = vector.extract_strided_slice %79 {offsets = [0, 0], sizes = [2, 32], strides = [1, 1]} : vector<2x96xf32> to vector<2x32xf32>
    %81 = vector.extract_strided_slice %79 {offsets = [0, 32], sizes = [2, 32], strides = [1, 1]} : vector<2x96xf32> to vector<2x32xf32>
    %82 = vector.extract_strided_slice %79 {offsets = [0, 64], sizes = [2, 32], strides = [1, 1]} : vector<2x96xf32> to vector<2x32xf32>
    %83 = vector.extract_strided_slice %73 {offsets = [0, 96], sizes = [2, 32], strides = [1, 1]} : vector<2x128xf32> to vector<2x32xf32>
    %84 = math.tanh %83 : vector<2x32xf32>
    %85 = arith.mulf %81, %68 : vector<2x32xf32>
    %86 = arith.mulf %80, %84 : vector<2x32xf32>
    %87 = arith.addf %85, %86 : vector<2x32xf32>
    %88 = math.tanh %87 : vector<2x32xf32>
    %89 = arith.mulf %82, %88 : vector<2x32xf32>
    %c0_32 = arith.constant 0 : index
    %c512 = arith.constant 512 : index
    %90 = vector.load %arg10[%c0_32, %c512] : memref<2x1024xf32, #tpu.memory_space<vmem>>, vector<2x128xf32>
    %cst_33 = arith.constant dense<0.000000e+00> : vector<2x128xf32>
    %91 = tpu.matmul %89, %7, %cst_33 {dimension_numbers = #tpu.dot_dimension_numbers<[1], [0], [0], [1], [0, 0, 1, 1], [], []>} : vector<2x32xf32>, vector<32x128xf32>, vector<2x128xf32> -> vector<2x128xf32>
    %92 = arith.addf %90, %91 : vector<2x128xf32>
    %93 = vector.extract_strided_slice %92 {offsets = [0, 0], sizes = [2, 96], strides = [1, 1]} : vector<2x128xf32> to vector<2x96xf32>
    %94 = arith.negf %93 : vector<2x96xf32>
    %95 = math.exp %94 : vector<2x96xf32>
    %cst_34 = arith.constant 1.000000e+00 : f32
    %96 = vector.broadcast %cst_34 : f32 to vector<2x96xf32>
    %97 = arith.addf %96, %95 : vector<2x96xf32>
    %98 = arith.divf %96, %97 : vector<2x96xf32>
    %99 = vector.extract_strided_slice %98 {offsets = [0, 0], sizes = [2, 32], strides = [1, 1]} : vector<2x96xf32> to vector<2x32xf32>
    %100 = vector.extract_strided_slice %98 {offsets = [0, 32], sizes = [2, 32], strides = [1, 1]} : vector<2x96xf32> to vector<2x32xf32>
    %101 = vector.extract_strided_slice %98 {offsets = [0, 64], sizes = [2, 32], strides = [1, 1]} : vector<2x96xf32> to vector<2x32xf32>
    %102 = vector.extract_strided_slice %92 {offsets = [0, 96], sizes = [2, 32], strides = [1, 1]} : vector<2x128xf32> to vector<2x32xf32>
    %103 = math.tanh %102 : vector<2x32xf32>
    %104 = arith.mulf %100, %87 : vector<2x32xf32>
    %105 = arith.mulf %99, %103 : vector<2x32xf32>
    %106 = arith.addf %104, %105 : vector<2x32xf32>
    %107 = math.tanh %106 : vector<2x32xf32>
    %108 = arith.mulf %101, %107 : vector<2x32xf32>
    %c0_35 = arith.constant 0 : index
    %c640 = arith.constant 640 : index
    %109 = vector.load %arg10[%c0_35, %c640] : memref<2x1024xf32, #tpu.memory_space<vmem>>, vector<2x128xf32>
    %cst_36 = arith.constant dense<0.000000e+00> : vector<2x128xf32>
    %110 = tpu.matmul %108, %7, %cst_36 {dimension_numbers = #tpu.dot_dimension_numbers<[1], [0], [0], [1], [0, 0, 1, 1], [], []>} : vector<2x32xf32>, vector<32x128xf32>, vector<2x128xf32> -> vector<2x128xf32>
    %111 = arith.addf %109, %110 : vector<2x128xf32>
    %112 = vector.extract_strided_slice %111 {offsets = [0, 0], sizes = [2, 96], strides = [1, 1]} : vector<2x128xf32> to vector<2x96xf32>
    %113 = arith.negf %112 : vector<2x96xf32>
    %114 = math.exp %113 : vector<2x96xf32>
    %cst_37 = arith.constant 1.000000e+00 : f32
    %115 = vector.broadcast %cst_37 : f32 to vector<2x96xf32>
    %116 = arith.addf %115, %114 : vector<2x96xf32>
    %117 = arith.divf %115, %116 : vector<2x96xf32>
    %118 = vector.extract_strided_slice %117 {offsets = [0, 0], sizes = [2, 32], strides = [1, 1]} : vector<2x96xf32> to vector<2x32xf32>
    %119 = vector.extract_strided_slice %117 {offsets = [0, 32], sizes = [2, 32], strides = [1, 1]} : vector<2x96xf32> to vector<2x32xf32>
    %120 = vector.extract_strided_slice %117 {offsets = [0, 64], sizes = [2, 32], strides = [1, 1]} : vector<2x96xf32> to vector<2x32xf32>
    %121 = vector.extract_strided_slice %111 {offsets = [0, 96], sizes = [2, 32], strides = [1, 1]} : vector<2x128xf32> to vector<2x32xf32>
    %122 = math.tanh %121 : vector<2x32xf32>
    %123 = arith.mulf %119, %106 : vector<2x32xf32>
    %124 = arith.mulf %118, %122 : vector<2x32xf32>
    %125 = arith.addf %123, %124 : vector<2x32xf32>
    %126 = math.tanh %125 : vector<2x32xf32>
    %127 = arith.mulf %120, %126 : vector<2x32xf32>
    %c0_38 = arith.constant 0 : index
    %c768 = arith.constant 768 : index
    %128 = vector.load %arg10[%c0_38, %c768] : memref<2x1024xf32, #tpu.memory_space<vmem>>, vector<2x128xf32>
    %cst_39 = arith.constant dense<0.000000e+00> : vector<2x128xf32>
    %129 = tpu.matmul %127, %7, %cst_39 {dimension_numbers = #tpu.dot_dimension_numbers<[1], [0], [0], [1], [0, 0, 1, 1], [], []>} : vector<2x32xf32>, vector<32x128xf32>, vector<2x128xf32> -> vector<2x128xf32>
    %130 = arith.addf %128, %129 : vector<2x128xf32>
    %131 = vector.extract_strided_slice %130 {offsets = [0, 0], sizes = [2, 96], strides = [1, 1]} : vector<2x128xf32> to vector<2x96xf32>
    %132 = arith.negf %131 : vector<2x96xf32>
    %133 = math.exp %132 : vector<2x96xf32>
    %cst_40 = arith.constant 1.000000e+00 : f32
    %134 = vector.broadcast %cst_40 : f32 to vector<2x96xf32>
    %135 = arith.addf %134, %133 : vector<2x96xf32>
    %136 = arith.divf %134, %135 : vector<2x96xf32>
    %137 = vector.extract_strided_slice %136 {offsets = [0, 0], sizes = [2, 32], strides = [1, 1]} : vector<2x96xf32> to vector<2x32xf32>
    %138 = vector.extract_strided_slice %136 {offsets = [0, 32], sizes = [2, 32], strides = [1, 1]} : vector<2x96xf32> to vector<2x32xf32>
    %139 = vector.extract_strided_slice %136 {offsets = [0, 64], sizes = [2, 32], strides = [1, 1]} : vector<2x96xf32> to vector<2x32xf32>
    %140 = vector.extract_strided_slice %130 {offsets = [0, 96], sizes = [2, 32], strides = [1, 1]} : vector<2x128xf32> to vector<2x32xf32>
    %141 = math.tanh %140 : vector<2x32xf32>
    %142 = arith.mulf %138, %125 : vector<2x32xf32>
    %143 = arith.mulf %137, %141 : vector<2x32xf32>
    %144 = arith.addf %142, %143 : vector<2x32xf32>
    %145 = math.tanh %144 : vector<2x32xf32>
    %146 = arith.mulf %139, %145 : vector<2x32xf32>
    %c0_41 = arith.constant 0 : index
    %c896 = arith.constant 896 : index
    %147 = vector.load %arg10[%c0_41, %c896] : memref<2x1024xf32, #tpu.memory_space<vmem>>, vector<2x128xf32>
    %cst_42 = arith.constant dense<0.000000e+00> : vector<2x128xf32>
    %148 = tpu.matmul %146, %7, %cst_42 {dimension_numbers = #tpu.dot_dimension_numbers<[1], [0], [0], [1], [0, 0, 1, 1], [], []>} : vector<2x32xf32>, vector<32x128xf32>, vector<2x128xf32> -> vector<2x128xf32>
    %149 = arith.addf %147, %148 : vector<2x128xf32>
    %150 = vector.extract_strided_slice %149 {offsets = [0, 0], sizes = [2, 96], strides = [1, 1]} : vector<2x128xf32> to vector<2x96xf32>
    %151 = arith.negf %150 : vector<2x96xf32>
    %152 = math.exp %151 : vector<2x96xf32>
    %cst_43 = arith.constant 1.000000e+00 : f32
    %153 = vector.broadcast %cst_43 : f32 to vector<2x96xf32>
    %154 = arith.addf %153, %152 : vector<2x96xf32>
    %155 = arith.divf %153, %154 : vector<2x96xf32>
    %156 = vector.extract_strided_slice %155 {offsets = [0, 0], sizes = [2, 32], strides = [1, 1]} : vector<2x96xf32> to vector<2x32xf32>
    %157 = vector.extract_strided_slice %155 {offsets = [0, 32], sizes = [2, 32], strides = [1, 1]} : vector<2x96xf32> to vector<2x32xf32>
    %158 = vector.extract_strided_slice %155 {offsets = [0, 64], sizes = [2, 32], strides = [1, 1]} : vector<2x96xf32> to vector<2x32xf32>
    %159 = vector.extract_strided_slice %149 {offsets = [0, 96], sizes = [2, 32], strides = [1, 1]} : vector<2x128xf32> to vector<2x32xf32>
    %160 = math.tanh %159 : vector<2x32xf32>
    %161 = arith.mulf %157, %144 : vector<2x32xf32>
    %162 = arith.mulf %156, %160 : vector<2x32xf32>
    %163 = arith.addf %161, %162 : vector<2x32xf32>
    %164 = math.tanh %163 : vector<2x32xf32>
    %165 = arith.mulf %158, %164 : vector<2x32xf32>
    %cst_44 = arith.constant dense<0.000000e+00> : vector<2x20xf32>
    %166 = tpu.matmul %165, %8, %cst_44 {dimension_numbers = #tpu.dot_dimension_numbers<[1], [0], [0], [1], [0, 0, 1, 1], [], []>} : vector<2x32xf32>, vector<32x20xf32>, vector<2x20xf32> -> vector<2x20xf32>
    %167 = vector.broadcast %9 : vector<1x20xf32> to vector<2x20xf32>
    %168 = arith.addf %166, %167 : vector<2x20xf32>
    %cst_45 = arith.constant 0.000000e+00 : f32
    %169 = vector.broadcast %cst_45 : f32 to vector<2x20xf32>
    %170 = arith.maximumf %168, %169 : vector<2x20xf32>
    %cst_46 = arith.constant dense<0.000000e+00> : vector<2x4xf32>
    %171 = tpu.matmul %170, %10, %cst_46 {dimension_numbers = #tpu.dot_dimension_numbers<[1], [0], [0], [1], [0, 0, 1, 1], [], []>} : vector<2x20xf32>, vector<20x4xf32>, vector<2x4xf32> -> vector<2x4xf32>
    %172 = vector.broadcast %11 : vector<1x4xf32> to vector<2x4xf32>
    %173 = arith.addf %171, %172 : vector<2x4xf32>
    %c0_47 = arith.constant 0 : index
    %c0_48 = arith.constant 0 : index
    %174 = vector.load %arg9[%c0_47, %c0_48] : memref<2x4xf32, #tpu.memory_space<vmem>>, vector<2x4xf32>
    tpu.vector_store %arg9[%c0_47, %c0_48], %173 {strides = array<i32>} : memref<2x4xf32, #tpu.memory_space<vmem>>, vector<2x4xf32>,
    return
  }
  func.func @transform_0(%arg0: i32) -> (i32, i32) {
    %c0_i32 = arith.constant 0 : i32
    %c0_i32_0 = arith.constant 0 : i32
    return %arg0, %c0_i32 : i32, i32
  }
  func.func @transform_1(%arg0: i32) -> (i32, i32) {
    %c0_i32 = arith.constant 0 : i32
    %c0_i32_0 = arith.constant 0 : i32
    %c0_i32_1 = arith.constant 0 : i32
    return %c0_i32, %c0_i32_0 : i32, i32
  }
  func.func @transform_2(%arg0: i32) -> (i32, i32) {
    %c0_i32 = arith.constant 0 : i32
    %c0_i32_0 = arith.constant 0 : i32
    %c0_i32_1 = arith.constant 0 : i32
    return %c0_i32, %c0_i32_0 : i32, i32
  }
  func.func @transform_3(%arg0: i32) -> (i32, i32) {
    %c0_i32 = arith.constant 0 : i32
    %c0_i32_0 = arith.constant 0 : i32
    %c0_i32_1 = arith.constant 0 : i32
    return %c0_i32, %c0_i32_0 : i32, i32
  }
  func.func @transform_4(%arg0: i32) -> (i32, i32) {
    %c0_i32 = arith.constant 0 : i32
    %c0_i32_0 = arith.constant 0 : i32
    %c0_i32_1 = arith.constant 0 : i32
    return %c0_i32, %c0_i32_0 : i32, i32
  }
  func.func @transform_5(%arg0: i32) -> (i32, i32) {
    %c0_i32 = arith.constant 0 : i32
    %c0_i32_0 = arith.constant 0 : i32
    %c0_i32_1 = arith.constant 0 : i32
    return %c0_i32, %c0_i32_0 : i32, i32
  }
  func.func @transform_6(%arg0: i32) -> (i32, i32) {
    %c0_i32 = arith.constant 0 : i32
    %c0_i32_0 = arith.constant 0 : i32
    %c0_i32_1 = arith.constant 0 : i32
    return %c0_i32, %c0_i32_0 : i32, i32
  }
  func.func @transform_7(%arg0: i32) -> (i32, i32) {
    %c0_i32 = arith.constant 0 : i32
    %c0_i32_0 = arith.constant 0 : i32
    %c0_i32_1 = arith.constant 0 : i32
    return %c0_i32, %c0_i32_0 : i32, i32
  }
  func.func @transform_8(%arg0: i32) -> (i32, i32) {
    %c0_i32 = arith.constant 0 : i32
    %c0_i32_0 = arith.constant 0 : i32
    return %arg0, %c0_i32 : i32, i32
  }
}

</mosaic_0001>

<bundles_post_ra>
// kernel: tpu_custom_call.1
= control target key start
LH: loop header
LB: loop body
LE: loop exit
PB: predicated region body
PF: predicated region fallthrough
CT: control target
= control target key end

     0   :  { %13 = vsyncpa [#allocation4], 0  ;;  %s2166_s0 = inlined_call_operand.vmem [shape: f32[2,128], index: 0, kind: input, shape index: {}]   ;;  %s2167_s1 = inlined_call_operand.hbm [shape: f32[128,1024], index: 1, kind: input, shape index: {}]   ;;  %s2168_s2 = inlined_call_operand.vmem [shape: f32[32,128], index: 2, kind: input, shape index: {}]   ;;  %s2169_s3 = inlined_call_operand.vmem [shape: f32[1,1024], index: 3, kind: input, shape index: {}]   ;;  %s2170_s4 = inlined_call_operand.vmem [shape: f32[32,20], index: 4, kind: input, shape index: {}]   ;;  %s2171_s5 = inlined_call_operand.vmem [shape: f32[1,20], index: 5, kind: input, shape index: {}]   ;;  %s2172_s6 = inlined_call_operand.vmem [shape: f32[20,4], index: 6, kind: input, shape index: {}]   ;;  %s2173_s7 = inlined_call_operand.vmem [shape: f32[1,4], index: 7, kind: input, shape index: {}]   ;;  %s2174_s8 = inlined_call_operand.hbm [shape: f32[2,4], index: 8, kind: output, shape index: {}]  }
   0x1   :  { %14 = vsyncpa [#allocation5], 0  ;;  %s1897_s27 = smov [#allocation3]  }
   0x2   :  { %s22_s28 = sshll.u32 %s1897_s27, 4  ;;  %s23_s28 = int_to_ptr.vmem [resolvable:$true] %s22_s28 }
   0x3   :  { %s1861_s29 = scalar_lea.vmem %s23_s28, 16384  ;;  %p1866_p1 = scmp.lt.s32.totalorder %s23_s28, %s23_s28 }
   0x4   :  { %p1862_p0 = scmp.ne.s32.totalorder %s23_s28, %s1861_s29  ;;  %p1867_p2 = scmp.lt.s32.totalorder %s1861_s29, %s1861_s29 }
   0x6   :  { %p1868_p3 = por %p1867_p2, %p1866_p1 }
   0x8   :  { %p1869_p4 = pnand %p1868_p3, %p1862_p0 }
   0xa   :  { %1872 = shalt.err (!%p1869_p4)
}
   0xb   :  { %s1898_s30 = smov 1024   ;;  %s1899_s9 = smov 64  }
   0xc   :  { %28 = dma.hbm_to_vmem [thread:$0]  %s2167_s1, 16384, %s23_s28, [#allocation4], %s1898_s30, %s1898_s30, %s1899_s9  }
   0xd   :  { %1893 = dma.done.wait [#allocation4], 16384  }
   0xe   :  { %1894 = vsyncadd [#allocation4], 4294950912  ;;  %v1900_v0 = vmov 0.0   ;;  %v166_v1 = vld [vmem:[#allocation3 + $0x3c8] sm:$0xff]  ;;  %v168_v2 = vld [vmem:[#allocation3 + $0x3d8] sm:$0xff]  ;;  %vm1901_vm0 = vmmov 0  }
   0xf   :  { %279 = vmatprep.mubr.f32.mxu0 %v1900_v0  ;;  %350 = vmatprep.mubr.f32.mxu1 %v1900_v0  ;;  %v165_v3 = vld [vmem:[#allocation3 + $0x3c0] sm:$0xff]  ;;  %v167_v4 = vld [vmem:[#allocation3 + $0x3d0] sm:$0xff]  ;;  %v158_v5 = vld [vmem:[#allocation3 + $0x388] sm:$0xff]  ;;  %vm559_vm1 = vcmask 261120   ;;  %vm1513_vm2 = vcmask 1043456   ;;  %vm1509_vm3 = vcmask 162816  }
  0x10   :  { %215 = vmatprep.subr.mxu0 %v166_v1  ;;  %286 = vmatprep.subr.mxu1 %v168_v2  ;;  %v160_v6 = vld [vmem:[#allocation3 + $0x398] sm:$0xff]  ;;  %v157_v7 = vld [vmem:[#allocation3 + $0x380] sm:$0xff]  ;;  %v159_v8 = vld [vmem:[#allocation3 + $0x390] sm:$0xff]  ;;  %s1904_s14 = smov [#allocation6]   ;;  %vm1587_vm4 = vcmask 25600  }
  0x11   :  { %216 = vmatpush1.msra.mxu0 %v165_v3  ;;  %287 = vmatpush1.msra.mxu1 %v167_v4  ;;  %v150_v9 = vld [vmem:[#allocation3 + $0x348] sm:$0xff]  ;;  %v152_v10 = vld [vmem:[#allocation3 + $0x358] sm:$0xff]  ;;  %v149_v11 = vld [vmem:[#allocation3 + $0x340] sm:$0xff]  ;;  %s1595_s15 = sshll.u32 %s1904_s14, 4  ;;  %s1596_s15 = int_to_ptr.vmem [resolvable:$true] %s1595_s15 }
  0x12   :  { %217 = vmatprep.subr.mxu0 %v158_v5  ;;  %288 = vmatprep.subr.mxu1 %v160_v6  ;;  %v151_v12 = vld [vmem:[#allocation3 + $0x350] sm:$0xff]  ;;  %v142_v13 = vld [vmem:[#allocation3 + $0x308] sm:$0xff]  ;;  %v144_v14 = vld [vmem:[#allocation3 + $0x318] sm:$0xff]  ;;  %p1878_p6 = scmp.lt.s32.totalorder %s1596_s15, %s1596_s15 }
  0x13   :  { %218 = vmatpush1.msra.mxu0 %v157_v7  ;;  %289 = vmatpush1.msra.mxu1 %v159_v8  ;;  %v141_v15 = vld [vmem:[#allocation3 + $0x300] sm:$0xff]  ;;  %v143_v16 = vld [vmem:[#allocation3 + $0x310] sm:$0xff]  ;;  %v134_v17 = vld [vmem:[#allocation3 + $0x2c8] sm:$0xff] }
  0x14   :  { %219 = vmatprep.subr.mxu0 %v150_v9  ;;  %290 = vmatprep.subr.mxu1 %v152_v10  ;;  %v136_v18 = vld [vmem:[#allocation3 + $0x2d8] sm:$0xff]  ;;  %v133_v19 = vld [vmem:[#allocation3 + $0x2c0] sm:$0xff]  ;;  %v135_v20 = vld [vmem:[#allocation3 + $0x2d0] sm:$0xff] }
  0x15   :  { %220 = vmatpush1.msra.mxu0 %v149_v11  ;;  %291 = vmatpush1.msra.mxu1 %v151_v12  ;;  %v126_v21 = vld [vmem:[#allocation3 + $0x288] sm:$0xff]  ;;  %v128_v22 = vld [vmem:[#allocation3 + $0x298] sm:$0xff]  ;;  %v125_v23 = vld [vmem:[#allocation3 + $0x280] sm:$0xff] }
  0x16   :  { %221 = vmatprep.subr.mxu0 %v142_v13  ;;  %292 = vmatprep.subr.mxu1 %v144_v14  ;;  %v127_v24 = vld [vmem:[#allocation3 + $0x290] sm:$0xff]  ;;  %v118_v25 = vld [vmem:[#allocation3 + $0x248] sm:$0xff]  ;;  %v120_v26 = vld [vmem:[#allocation3 + $0x258] sm:$0xff] }
  0x17   :  { %222 = vmatpush1.msra.mxu0 %v141_v15  ;;  %293 = vmatpush1.msra.mxu1 %v143_v16  ;;  %v117_v27 = vld [vmem:[#allocation3 + $0x240] sm:$0xff]  ;;  %v119_v28 = vld [vmem:[#allocation3 + $0x250] sm:$0xff]  ;;  %v110_v29 = vld [vmem:[#allocation3 + $0x208] sm:$0xff] }
  0x18   :  { %223 = vmatprep.subr.mxu0 %v134_v17  ;;  %294 = vmatprep.subr.mxu1 %v136_v18  ;;  %v112_v30 = vld [vmem:[#allocation3 + $0x218] sm:$0xff]  ;;  %v109_v31 = vld [vmem:[#allocation3 + $0x200] sm:$0xff]  ;;  %v111_v32 = vld [vmem:[#allocation3 + $0x210] sm:$0xff] }
  0x19   :  { %224 = vmatpush1.msra.mxu0 %v133_v19  ;;  %295 = vmatpush1.msra.mxu1 %v135_v20  ;;  %v102_v33 = vld [vmem:[#allocation3 + $0x1c8] sm:$0xff]  ;;  %v104_v34 = vld [vmem:[#allocation3 + $0x1d8] sm:$0xff]  ;;  %v101_v35 = vld [vmem:[#allocation3 + $0x1c0] sm:$0xff] }
  0x1a   :  { %225 = vmatprep.subr.mxu0 %v126_v21  ;;  %296 = vmatprep.subr.mxu1 %v128_v22  ;;  %v103_v36 = vld [vmem:[#allocation3 + $0x1d0] sm:$0xff]  ;;  %v94_v37 = vld [vmem:[#allocation3 + $0x188] sm:$0xff]  ;;  %v96_v38 = vld [vmem:[#allocation3 + $0x198] sm:$0xff] }
  0x1b   :  { %226 = vmatpush1.msra.mxu0 %v125_v23  ;;  %297 = vmatpush1.msra.mxu1 %v127_v24  ;;  %v93_v39 = vld [vmem:[#allocation3 + $0x180] sm:$0xff]  ;;  %v95_v40 = vld [vmem:[#allocation3 + $0x190] sm:$0xff]  ;;  %v86_v41 = vld [vmem:[#allocation3 + $0x148] sm:$0xff] }
  0x1c   :  { %227 = vmatprep.subr.mxu0 %v118_v25  ;;  %298 = vmatprep.subr.mxu1 %v120_v26  ;;  %v88_v42 = vld [vmem:[#allocation3 + $0x158] sm:$0xff]  ;;  %v85_v43 = vld [vmem:[#allocation3 + $0x140] sm:$0xff]  ;;  %v87_v44 = vld [vmem:[#allocation3 + $0x150] sm:$0xff] }
  0x1d   :  { %228 = vmatpush1.msra.mxu0 %v117_v27  ;;  %299 = vmatpush1.msra.mxu1 %v119_v28  ;;  %v78_v45 = vld [vmem:[#allocation3 + $0x108] sm:$0xff]  ;;  %v80_v46 = vld [vmem:[#allocation3 + $0x118] sm:$0xff]  ;;  %v77_v47 = vld [vmem:[#allocation3 + $0x100] sm:$0xff] }
  0x1e   :  { %229 = vmatprep.subr.mxu0 %v110_v29  ;;  %300 = vmatprep.subr.mxu1 %v112_v30  ;;  %v79_v48 = vld [vmem:[#allocation3 + $0x110] sm:$0xff]  ;;  %v70_v49 = vld [vmem:[#allocation3 + $0xc8] sm:$0xff]  ;;  %v72_v50 = vld [vmem:[#allocation3 + $0xd8] sm:$0xff] }
  0x1f   :  { %230 = vmatpush1.msra.mxu0 %v109_v31  ;;  %301 = vmatpush1.msra.mxu1 %v111_v32  ;;  %v69_v51 = vld [vmem:[#allocation3 + $0xc0] sm:$0xff]  ;;  %v71_v52 = vld [vmem:[#allocation3 + $0xd0] sm:$0xff]  ;;  %v62_v53 = vld [vmem:[#allocation3 + $0x88] sm:$0xff] }
  0x20   :  { %231 = vmatprep.subr.mxu0 %v102_v33  ;;  %302 = vmatprep.subr.mxu1 %v104_v34  ;;  %v64_v54 = vld [vmem:[#allocation3 + $0x98] sm:$0xff]  ;;  %v61_v55 = vld [vmem:[#allocation3 + $0x80] sm:$0xff]  ;;  %v63_v56 = vld [vmem:[#allocation3 + $0x90] sm:$0xff] }
  0x21   :  { %232 = vmatpush1.msra.mxu0 %v101_v35  ;;  %303 = vmatpush1.msra.mxu1 %v103_v36  ;;  %v54_v57 = vld [vmem:[#allocation3 + $0x48] sm:$0xff]  ;;  %v56_v58 = vld [vmem:[#allocation3 + $0x58] sm:$0xff]  ;;  %v53_v59 = vld [vmem:[#allocation3 + $0x40] sm:$0xff] }
  0x22   :  { %233 = vmatprep.subr.mxu0 %v94_v37  ;;  %304 = vmatprep.subr.mxu1 %v96_v38  ;;  %v55_v60 = vld [vmem:[#allocation3 + $0x50] sm:$0xff]  ;;  %v46_v61 = vld [vmem:[#allocation3 + $0x8] sm:$0xff]  ;;  %v48_v62 = vld [vmem:[#allocation3 + $0x18] sm:$0xff] }
  0x23   :  { %234 = vmatpush1.msra.mxu0 %v93_v39  ;;  %305 = vmatpush1.msra.mxu1 %v95_v40  ;;  %v45_v63 = vld [vmem:[#allocation3] sm:$0xff]  ;;  %v47_v1 = vld [vmem:[#allocation3 + $0x10] sm:$0xff]  ;;  %v170_v3 = vld [vmem:[#allocation3 + $0x3e8] sm:$0xff] }
  0x24   :  { %235 = vmatprep.subr.mxu0 %v86_v41  ;;  %306 = vmatprep.subr.mxu1 %v88_v42  ;;  %v1959_v2 = vld [vmem:[%s2166_s0] sm:$0x3]  ;;  %v172_v4 = vld [vmem:[#allocation3 + $0x3f8] sm:$0xff]  ;;  %v169_v5 = vld [vmem:[#allocation3 + $0x3e0] sm:$0xff] }
  0x25   :  { %236 = vmatpush1.msra.mxu0 %v85_v43  ;;  %307 = vmatpush1.msra.mxu1 %v87_v44  ;;  %v171_v6 = vld [vmem:[#allocation3 + $0x3f0] sm:$0xff]  ;;  %v162_v7 = vld [vmem:[#allocation3 + $0x3a8] sm:$0xff]  ;;  %v164_v8 = vld [vmem:[#allocation3 + $0x3b8] sm:$0xff] }
  0x26   :  { %237 = vmatprep.subr.mxu0 %v78_v45  ;;  %308 = vmatprep.subr.mxu1 %v80_v46  ;;  %v161_v9 = vld [vmem:[#allocation3 + $0x3a0] sm:$0xff]  ;;  %v163_v10 = vld [vmem:[#allocation3 + $0x3b0] sm:$0xff]  ;;  %v154_v11 = vld [vmem:[#allocation3 + $0x368] sm:$0xff] }
  0x27   :  { %238 = vmatpush1.msra.mxu0 %v77_v47  ;;  %309 = vmatpush1.msra.mxu1 %v79_v48  ;;  %v156_v12 = vld [vmem:[#allocation3 + $0x378] sm:$0xff]  ;;  %v153_v13 = vld [vmem:[#allocation3 + $0x360] sm:$0xff]  ;;  %v155_v14 = vld [vmem:[#allocation3 + $0x370] sm:$0xff] }
  0x28   :  { %239 = vmatprep.subr.mxu0 %v70_v49  ;;  %310 = vmatprep.subr.mxu1 %v72_v50  ;;  %v146_v15 = vld [vmem:[#allocation3 + $0x328] sm:$0xff]  ;;  %v148_v16 = vld [vmem:[#allocation3 + $0x338] sm:$0xff]  ;;  %v145_v17 = vld [vmem:[#allocation3 + $0x320] sm:$0xff] }
  0x29   :  { %240 = vmatpush1.msra.mxu0 %v69_v51  ;;  %311 = vmatpush1.msra.mxu1 %v71_v52  ;;  %v147_v18 = vld [vmem:[#allocation3 + $0x330] sm:$0xff]  ;;  %v138_v19 = vld [vmem:[#allocation3 + $0x2e8] sm:$0xff]  ;;  %v140_v20 = vld [vmem:[#allocation3 + $0x2f8] sm:$0xff] }
  0x2a   :  { %241 = vmatprep.subr.mxu0 %v62_v53  ;;  %312 = vmatprep.subr.mxu1 %v64_v54  ;;  %v137_v21 = vld [vmem:[#allocation3 + $0x2e0] sm:$0xff]  ;;  %v139_v22 = vld [vmem:[#allocation3 + $0x2f0] sm:$0xff]  ;;  %v130_v23 = vld [vmem:[#allocation3 + $0x2a8] sm:$0xff] }
  0x2b   :  { %242 = vmatpush1.msra.mxu0 %v61_v55  ;;  %313 = vmatpush1.msra.mxu1 %v63_v56  ;;  %v132_v24 = vld [vmem:[#allocation3 + $0x2b8] sm:$0xff]  ;;  %v129_v25 = vld [vmem:[#allocation3 + $0x2a0] sm:$0xff]  ;;  %v131_v26 = vld [vmem:[#allocation3 + $0x2b0] sm:$0xff] }
  0x2c   :  { %243 = vmatprep.subr.mxu0 %v54_v57  ;;  %314 = vmatprep.subr.mxu1 %v56_v58  ;;  %v122_v27 = vld [vmem:[#allocation3 + $0x268] sm:$0xff]  ;;  %v124_v28 = vld [vmem:[#allocation3 + $0x278] sm:$0xff]  ;;  %v121_v29 = vld [vmem:[#allocation3 + $0x260] sm:$0xff] }
  0x2d   :  { %244 = vmatpush1.msra.mxu0 %v53_v59  ;;  %315 = vmatpush1.msra.mxu1 %v55_v60  ;;  %v123_v30 = vld [vmem:[#allocation3 + $0x270] sm:$0xff]  ;;  %v114_v31 = vld [vmem:[#allocation3 + $0x228] sm:$0xff]  ;;  %v116_v32 = vld [vmem:[#allocation3 + $0x238] sm:$0xff] }
  0x2e   :  { %245 = vmatprep.subr.mxu0 %v46_v61  ;;  %316 = vmatprep.subr.mxu1 %v48_v62  ;;  %v113_v33 = vld [vmem:[#allocation3 + $0x220] sm:$0xff]  ;;  %v115_v34 = vld [vmem:[#allocation3 + $0x230] sm:$0xff]  ;;  %v106_v35 = vld [vmem:[#allocation3 + $0x1e8] sm:$0xff] }
  0x2f   :  { %246 = vmatpush1.msra.mxu0 %v45_v63  ;;  %317 = vmatpush1.msra.mxu1 %v47_v1  ;;  %v108_v36 = vld [vmem:[#allocation3 + $0x1f8] sm:$0xff]  ;;  %v105_v37 = vld [vmem:[#allocation3 + $0x1e0] sm:$0xff]  ;;  %v107_v38 = vld [vmem:[#allocation3 + $0x1f0] sm:$0xff] }
  0x30   :  { %280 = vmatmul.mubr.f32.vlgmr.msra.gmra.mxu0 %v1959_v2  ;;  %351 = vmatmul.mubr.f32.vlgmr.msra.gmra.mxu1 %v1959_v2  ;;  %v98_v39 = vld [vmem:[#allocation3 + $0x1a8] sm:$0xff]  ;;  %v100_v40 = vld [vmem:[#allocation3 + $0x1b8] sm:$0xff]  ;;  %v97_v41 = vld [vmem:[#allocation3 + $0x1a0] sm:$0xff] }
  0x31   :  { %357 = vmatprep.subr.mxu0 %v170_v3  ;;  %428 = vmatprep.subr.mxu1 %v172_v4  ;;  %v99_v42 = vld [vmem:[#allocation3 + $0x1b0] sm:$0xff]  ;;  %v90_v43 = vld [vmem:[#allocation3 + $0x168] sm:$0xff]  ;;  %v92_v44 = vld [vmem:[#allocation3 + $0x178] sm:$0xff] }
  0x32   :  { %358 = vmatpush1.msra.mxu0 %v169_v5  ;;  %429 = vmatpush1.msra.mxu1 %v171_v6  ;;  %v89_v45 = vld [vmem:[#allocation3 + $0x160] sm:$0xff]  ;;  %v91_v46 = vld [vmem:[#allocation3 + $0x170] sm:$0xff]  ;;  %v82_v47 = vld [vmem:[#allocation3 + $0x128] sm:$0xff] }
  0x33   :  { %359 = vmatprep.subr.mxu0 %v162_v7  ;;  %430 = vmatprep.subr.mxu1 %v164_v8  ;;  %v84_v48 = vld [vmem:[#allocation3 + $0x138] sm:$0xff]  ;;  %v81_v49 = vld [vmem:[#allocation3 + $0x120] sm:$0xff]  ;;  %v83_v50 = vld [vmem:[#allocation3 + $0x130] sm:$0xff]  ;;  %v175_v8 = vlaneseq }
  0x34   :  { %360 = vmatpush1.msra.mxu0 %v161_v9  ;;  %431 = vmatpush1.msra.mxu1 %v163_v10  ;;  %v74_v51 = vld [vmem:[#allocation3 + $0xe8] sm:$0xff]  ;;  %v76_v52 = vld [vmem:[#allocation3 + $0xf8] sm:$0xff]  ;;  %v73_v53 = vld [vmem:[#allocation3 + $0xe0] sm:$0xff] }
  0x35   :  { %361 = vmatprep.subr.mxu0 %v154_v11  ;;  %432 = vmatprep.subr.mxu1 %v156_v12  ;;  %v75_v54 = vld [vmem:[#allocation3 + $0xf0] sm:$0xff]  ;;  %v66_v55 = vld [vmem:[#allocation3 + $0xa8] sm:$0xff]  ;;  %v68_v56 = vld [vmem:[#allocation3 + $0xb8] sm:$0xff]  ;;  %v176_v9 = vshrl.u32 %v175_v8, 7 }
  0x36   :  { %362 = vmatpush1.msra.mxu0 %v153_v13  ;;  %433 = vmatpush1.msra.mxu1 %v155_v14  ;;  %v65_v57 = vld [vmem:[#allocation3 + $0xa0] sm:$0xff]  ;;  %v67_v58 = vld [vmem:[#allocation3 + $0xb0] sm:$0xff]  ;;  %v58_v59 = vld [vmem:[#allocation3 + $0x68] sm:$0xff]  ;;  %v1902_v14 = vmov 1983009808  }
  0x37   :  { %363 = vmatprep.subr.mxu0 %v146_v15  ;;  %434 = vmatprep.subr.mxu1 %v148_v16  ;;  %v60_v60 = vld [vmem:[#allocation3 + $0x78] sm:$0xff]  ;;  %v57_v61 = vld [vmem:[#allocation3 + $0x60] sm:$0xff]  ;;  %v59_v62 = vld [vmem:[#allocation3 + $0x70] sm:$0xff]  ;;  %v177_v10 = vsub.s32 0, %v176_v9  ;;  %v185_v11 = vsub.s32 2, %v176_v9  ;;  %v181_v13 = vsub.s32 1, %v176_v9  ;;  %v510_v15 = vunpack.c.l.s4 %v1902_v14 }
  0x38   :  { %364 = vmatpush1.msra.mxu0 %v145_v17  ;;  %435 = vmatpush1.msra.mxu1 %v147_v18  ;;  %v50_v63 = vld [vmem:[#allocation3 + $0x28] sm:$0xff]  ;;  %v52_v1 = vld [vmem:[#allocation3 + $0x38] sm:$0xff]  ;;  %v49_v3 = vld [vmem:[#allocation3 + $0x20] sm:$0xff]  ;;  %v189_v16 = vsub.s32 3, %v176_v9 }
  0x39   :  { %365 = vmatprep.subr.mxu0 %v138_v19  ;;  %436 = vmatprep.subr.mxu1 %v140_v20  ;;  %v51_v4 = vld [vmem:[#allocation3 + $0x30] sm:$0xff]  ;;  %v1968_v5 = vld [vmem:[%s2168_s2 + $0x18] sm:$0xff]  ;;  %v1976_v6 = vld [vmem:[%s2168_s2 + $0x10] sm:$0xff]  ;;  %v511_v20 = vunpack.c.0.s8 %v510_v15 }
  0x3a   :  { %366 = vmatpush1.msra.mxu0 %v137_v21  ;;  %437 = vmatpush1.msra.mxu1 %v139_v22  ;;  %v1995_v7 = vld [vmem:[%s2168_s2] sm:$0xff] }
  0x3b   :  { %367 = vmatprep.subr.mxu0 %v130_v23  ;;  %438 = vmatprep.subr.mxu1 %v132_v24  ;;  %v173_v12 = vld [vmem:[%s2169_s3] sm:$0xff]  ;;  %s1903_s3 = smov 32  }
  0x3c   :  { %368 = vmatpush1.msra.mxu0 %v129_v25  ;;  %439 = vmatpush1.msra.mxu1 %v131_v26  ;;  %v178_v17 = vrot.slane %v173_v12, %v177_v10  ;;  %v186_v18 = vrot.slane %v173_v12, %v185_v11  ;;  %v182_v19 = vrot.slane %v173_v12, %v181_v13 }
  0x3d   :  { %369 = vmatprep.subr.mxu0 %v122_v27  ;;  %440 = vmatprep.subr.mxu1 %v124_v28  ;;  %v190_v21 = vrot.slane %v173_v12, %v189_v16 }
  0x3e   :  { %370 = vmatpush1.msra.mxu0 %v121_v29  ;;  %441 = vmatpush1.msra.mxu1 %v123_v30  ;;  %v2023_v29 = vsub.s32 %v511_v20, %v176_v9 }
  0x3f   :  { %371 = vmatprep.subr.mxu0 %v114_v31  ;;  %442 = vmatprep.subr.mxu1 %v116_v32 }
  0x40   :  { %372 = vmatpush1.msra.mxu0 %v113_v33  ;;  %443 = vmatpush1.msra.mxu1 %v115_v34 }
  0x41   :  { %373 = vmatprep.subr.mxu0 %v106_v35  ;;  %444 = vmatprep.subr.mxu1 %v108_v36  ;;  %v193_v36 = vsub.s32 4, %v176_v9 }
  0x42   :  { %374 = vmatpush1.msra.mxu0 %v105_v37  ;;  %445 = vmatpush1.msra.mxu1 %v107_v38  ;;  %v201_v37 = vsub.s32 6, %v176_v9  ;;  %v197_v38 = vsub.s32 5, %v176_v9 }
  0x43   :  { %375 = vmatprep.subr.mxu0 %v98_v39  ;;  %446 = vmatprep.subr.mxu1 %v100_v40  ;;  %v205_v39 = vsub.s32 7, %v176_v9  ;;  %v194_v40 = vrot.slane %v173_v12, %v193_v36 }
  0x44   :  { %376 = vmatpush1.msra.mxu0 %v97_v41  ;;  %447 = vmatpush1.msra.mxu1 %v99_v42  ;;  %v202_v41 = vrot.slane %v173_v12, %v201_v37  ;;  %v198_v42 = vrot.slane %v173_v12, %v197_v38 }
  0x45   :  { %377 = vmatprep.subr.mxu0 %v90_v43  ;;  %448 = vmatprep.subr.mxu1 %v92_v44  ;;  %v206_v43 = vrot.slane %v173_v12, %v205_v39 }
  0x46   :  { %378 = vmatpush1.msra.mxu0 %v89_v45  ;;  %449 = vmatpush1.msra.mxu1 %v91_v46 }
  0x47   :  { %379 = vmatprep.subr.mxu0 %v82_v47  ;;  %450 = vmatprep.subr.mxu1 %v84_v48 }
  0x48   :  { %380 = vmatpush1.msra.mxu0 %v81_v49  ;;  %451 = vmatpush1.msra.mxu1 %v83_v50 }
  0x49   :  { %381 = vmatprep.subr.mxu0 %v74_v51  ;;  %452 = vmatprep.subr.mxu1 %v76_v52 }
  0x4a   :  { %382 = vmatpush1.msra.mxu0 %v73_v53  ;;  %453 = vmatpush1.msra.mxu1 %v75_v54 }
  0x4b   :  { %383 = vmatprep.subr.mxu0 %v66_v55  ;;  %454 = vmatprep.subr.mxu1 %v68_v56 }
  0x4c   :  { %384 = vmatpush1.msra.mxu0 %v65_v57  ;;  %455 = vmatpush1.msra.mxu1 %v67_v58 }
  0x4d   :  { %385 = vmatprep.subr.mxu0 %v58_v59  ;;  %456 = vmatprep.subr.mxu1 %v60_v60 }
  0x4e   :  { %386 = vmatpush1.msra.mxu0 %v57_v61  ;;  %457 = vmatpush1.msra.mxu1 %v59_v62 }
  0x4f   :  { %387 = vmatprep.subr.mxu0 %v50_v63  ;;  %458 = vmatprep.subr.mxu1 %v52_v1 }
  0x50   :  { %388 = vmatpush1.msra.mxu0 %v49_v3  ;;  %421 = vmatprep.mubr.f32.mxu0 %v1900_v0 }
  0x51   :  { %459 = vmatpush1.msra.mxu1 %v51_v4  ;;  %492 = vmatprep.mubr.f32.mxu1 %v1900_v0 }
  0x52   :  { %422 = vmatmul.mubr.f32.vlgmr.msra.gmra.mxu0 %v1959_v2  ;;  %493 = vmatmul.mubr.f32.vlgmr.msra.gmra.mxu1 %v1959_v2  ;;  %v1986_v2 = vld [vmem:[%s2168_s2 + $0x8] sm:$0xff] }
  0x53   :  { %1673 = vmatprep.subr.mxu0 %v1900_v0  ;;  %1681 = vmatprep.mubr.msk.f32.mxu0 %vm1901_vm0, %v1900_v0 }
  0x54   :  { %1674 = vmatpush3.msra.mxu0 %v1968_v5  ;;  %1684 = vmatprep.subr.mxu1 %v1900_v0 }
  0x55   :  { %1675 = vmatprep.subr.mxu0 %v1900_v0  ;;  %1685 = vmatpush3.msra.mxu1 %v1968_v5 }
  0x56   :  { %1676 = vmatpush3.msra.mxu0 %v1976_v6  ;;  %1686 = vmatprep.subr.mxu1 %v1900_v0 }
  0x57   :  { %1677 = vmatprep.subr.mxu0 %v1900_v0  ;;  %1687 = vmatpush3.msra.mxu1 %v1976_v6 }
  0x58   :  { %1678 = vmatpush3.msra.mxu0 %v1986_v2  ;;  %1688 = vmatprep.subr.mxu1 %v1900_v0 }
  0x59   :  { %1679 = vmatprep.subr.mxu0 %v1900_v0  ;;  %1689 = vmatpush3.msra.mxu1 %v1986_v2 }
  0x5a   :  { %1680 = vmatpush3.msra.mxu0 %v1995_v7  ;;  %1690 = vmatprep.subr.mxu1 %v1900_v0 }
  0x5b   :  { %1682 = vmatmul.mubr.f32.vlgmr.msra.gmra.mxu0 %v1900_v0  ;;  %1691 = vmatpush3.msra.mxu1 %v1995_v7 }
  0x5c   :  { %1692 = vmatprep.mubr.msk.f32.mxu1 %vm1901_vm0, %v1900_v0  ;;  %1695 = vmatprep.subr.mxu0 %v1900_v0 }
  0x5d   :  { %1696 = vmatpush3.msra.mxu0 %v1968_v5  ;;  %1703 = vmatprep.mubr.msk.f32.mxu0 %vm1901_vm0, %v1900_v0 }
  0x5e   :  { %1697 = vmatprep.subr.mxu0 %v1900_v0  ;;  %1706 = vmatprep.subr.mxu1 %v1900_v0 }
  0x5f   :  { %1698 = vmatpush3.msra.mxu0 %v1976_v6 }
  0x60   :  { %1699 = vmatprep.subr.mxu0 %v1900_v0 }
  0x61   :  { %1700 = vmatpush3.msra.mxu0 %v1986_v2 }
  0x62   :  { %1701 = vmatprep.subr.mxu0 %v1900_v0 }
  0x63   :  { %1702 = vmatpush3.msra.mxu0 %v1995_v7 }
  0x64   :  { %1717 = vmatprep.subr.mxu0 %v1900_v0 }
  0xf0   :  { %v281_v22 = vpop.f32.mrf.mxu0  ;;  %v352_v23 = vpop.f32.mrf.mxu1 }
  0xf1   :  { %v282_v24 = vadd.f32 %v281_v22, %v178_v17  ;;  %v353_v25 = vadd.f32 %v352_v23, %v186_v18 }
  0xf2   :  { %v283_v26 = vpop.f32.mrf.mxu0  ;;  %v354_v27 = vpop.f32.mrf.mxu1 }
  0xf3   :  { %v284_v28 = vadd.f32 %v283_v26, %v182_v19  ;;  %v355_v30 = vadd.f32 %v354_v27, %v190_v21 }
  0xf5   :  { %v507_v31 = vcombine.low %v282_v24, %v284_v28  ;;  %v508_v32 = vcombine.low %v353_v25, %v355_v30 }
  0xf7   :  { %v515_v33 = vrot.slane %v507_v31, %v2023_v29  ;;  %v522_v34 = vrot.slane %v508_v32, %v2023_v29 }
  0xf9   :  { %v523_v35 = vcombine.low %v515_v33, %v522_v34 }
  0xfb   :  { %543 = vst [vmem:[#allocation2] sm:$0xff] %v523_v35 }
 0x102   :  { %v558_v57 = vld [vmem:[#allocation2] sm:$0x3]  ;;  %v658_v17 = vld [vmem:[#allocation2 + $0x2] sm:$0x3]  ;;  %v766_v37 = vld [vmem:[#allocation2 + $0x4] sm:$0x3] }
 0x112   :  { %v423_v44 = vpop.f32.mrf.mxu0  ;;  %v494_v45 = vpop.f32.mrf.mxu1 }
 0x113   :  { %v424_v46 = vadd.f32 %v423_v44, %v194_v40  ;;  %v495_v47 = vadd.f32 %v494_v45, %v202_v41 }
 0x114   :  { %v425_v48 = vpop.f32.mrf.mxu0  ;;  %v496_v49 = vpop.f32.mrf.mxu1 }
 0x115   :  { %v426_v50 = vadd.f32 %v425_v48, %v198_v42  ;;  %v497_v51 = vadd.f32 %v496_v49, %v206_v43 }
 0x117   :  { %v524_v52 = vcombine.low %v424_v46, %v426_v50  ;;  %v525_v53 = vcombine.low %v495_v47, %v497_v51 }
 0x119   :  { %v532_v54 = vrot.slane %v524_v52, %v2023_v29  ;;  %v539_v55 = vrot.slane %v525_v53, %v2023_v29 }
 0x11b   :  { %v540_v56 = vcombine.low %v532_v54, %v539_v55  ;;  %v629_v58 = vpop.f32.mrf.mxu0 }
 0x11c   :  { %v633_v59 = vadd.f32 %v629_v58, %v558_v57 }
 0x11d   :  { %544 = vst [vmem:[#allocation2 + $0x8] sm:$0xff] %v540_v56  ;;  %v1683_v60 = vpop.f32.mrf.mxu0  ;;  %v874_v56 = vld [vmem:[#allocation2 + $0x6] sm:$0x3] }
 0x11e   :  { %1789 = vtanh.f32 %v633_v59  ;;  %v1604_v62 = vmul.f32 -1.442695, %v633_v59 }
 0x120   :  { %1791 = vpow2.f32 %v1604_v62 }
 0x12b   :  { %v1790_v61 = vpop.eup %1789 }
 0x12c   :  { %643 = vrot.lane.b32.xlu0 %v1790_v61, %s1903_s3 }
 0x12d   :  { %v1792_v63 = vpop.eup %1791 }
 0x12e   :  { %v637_v1 = vadd.f32 1.0, %v1792_v63 }
 0x130   :  { %1793 = vrcp.f32 %v637_v1 }
 0x13d   :  { %v1794_v3 = vpop.eup %1793 }
 0x13e   :  { %v641_v9 = vmul.f32 0.0, %v1794_v3 }
 0x19e   :  { %v644_v4 = vpop.permute.xlu0 %643 }
 0x19f   :  { %v646_v8 = vmul.f32 %v1794_v3, %v644_v4 }
 0x1a1   :  { %648 = vrot.lane.b32.xlu0 %v646_v8, %s1903_s3 }
 0x213   :  { %v649_v10 = vpop.permute.xlu0 %648 }
 0x214   :  { %v651_v11 = vadd.f32 %v649_v10, %v641_v9 }
 0x216   :  { %1795 = vtanh.f32 %v651_v11 }
 0x223   :  { %v1796_v12 = vpop.eup %1795 }
 0x224   :  { %654 = vrot.lane.b32.xlu1 %v1796_v12, %s1903_s3 }
 0x296   :  { %v655_v13 = vpop.permute.xlu1 %654 }
 0x297   :  { %v657_v14 = vmul.f32 %v1794_v3, %v655_v13 }
 0x299   :  { %v666_v15 = vrot.slane %v657_v14, %v2023_v29 }
 0x29b   :  { %667 = vrot.lane.b32.xlu1 %v666_v15, %s1899_s9 }
 0x30d   :  { %v668_v16 = vpop.permute.xlu1 %667 }
 0x30e   :  { %1693 = vmatmul.mubr.msk.f32.vlgmr.msra.gmra.mxu1 %vm559_vm1, %v668_v16  ;;  %v982_v16 = vld [vmem:[#allocation2 + $0x8] sm:$0x3] }
 0x30f   :  { %1707 = vmatpush3.msra.mxu1 %v1968_v5  ;;  %1714 = vmatprep.mubr.msk.f32.mxu1 %vm1901_vm0, %v1900_v0 }
 0x310   :  { %1708 = vmatprep.subr.mxu1 %v1900_v0 }
 0x311   :  { %1709 = vmatpush3.msra.mxu1 %v1976_v6 }
 0x312   :  { %1710 = vmatprep.subr.mxu1 %v1900_v0 }
 0x313   :  { %1711 = vmatpush3.msra.mxu1 %v1986_v2 }
 0x314   :  { %1712 = vmatprep.subr.mxu1 %v1900_v0 }
 0x315   :  { %1713 = vmatpush3.msra.mxu1 %v1995_v7 }
 0x316   :  { %1728 = vmatprep.subr.mxu1 %v1900_v0 }
 0x3ce   :  { %v737_v18 = vpop.f32.mrf.mxu1 }
 0x3cf   :  { %v741_v19 = vadd.f32 %v737_v18, %v658_v17 }
 0x3d0   :  { %v1694_v20 = vpop.f32.mrf.mxu1 }
 0x3d1   :  { %1797 = vtanh.f32 %v741_v19  ;;  %v1606_v22 = vmul.f32 -1.442695, %v741_v19 }
 0x3d3   :  { %1799 = vpow2.f32 %v1606_v22 }
 0x3de   :  { %v1798_v21 = vpop.eup %1797 }
 0x3df   :  { %751 = vrot.lane.b32.xlu0 %v1798_v21, %s1903_s3 }
 0x3e0   :  { %v1800_v23 = vpop.eup %1799 }
 0x3e1   :  { %v745_v24 = vadd.f32 1.0, %v1800_v23 }
 0x3e3   :  { %1801 = vrcp.f32 %v745_v24 }
 0x3f0   :  { %v1802_v25 = vpop.eup %1801 }
 0x3f1   :  { %v749_v28 = vmul.f32 %v1802_v25, %v651_v11 }
 0x451   :  { %v752_v26 = vpop.permute.xlu0 %751 }
 0x452   :  { %v754_v27 = vmul.f32 %v1802_v25, %v752_v26 }
 0x454   :  { %756 = vrot.lane.b32.xlu1 %v754_v27, %s1903_s3 }
 0x4c6   :  { %v757_v30 = vpop.permute.xlu1 %756 }
 0x4c7   :  { %v759_v31 = vadd.f32 %v757_v30, %v749_v28 }
 0x4c9   :  { %1803 = vtanh.f32 %v759_v31 }
 0x4d6   :  { %v1804_v32 = vpop.eup %1803 }
 0x4d7   :  { %762 = vrot.lane.b32.xlu0 %v1804_v32, %s1903_s3 }
 0x549   :  { %v763_v33 = vpop.permute.xlu0 %762 }
 0x54a   :  { %v765_v34 = vmul.f32 %v1802_v25, %v763_v33 }
 0x54c   :  { %v774_v35 = vrot.slane %v765_v34, %v2023_v29 }
 0x54e   :  { %775 = vrot.lane.b32.xlu1 %v774_v35, %s1899_s9 }
 0x5c0   :  { %v776_v36 = vpop.permute.xlu1 %775 }
 0x5c1   :  { %1704 = vmatmul.mubr.msk.f32.vlgmr.msra.gmra.mxu0 %vm559_vm1, %v776_v36  ;;  %v1090_v36 = vld [vmem:[#allocation2 + $0xa] sm:$0x3] }
 0x5c2   :  { %1718 = vmatpush3.msra.mxu0 %v1968_v5  ;;  %1725 = vmatprep.mubr.msk.f32.mxu0 %vm1901_vm0, %v1900_v0 }
 0x5c3   :  { %1719 = vmatprep.subr.mxu0 %v1900_v0 }
 0x5c4   :  { %1720 = vmatpush3.msra.mxu0 %v1976_v6 }
 0x5c5   :  { %1721 = vmatprep.subr.mxu0 %v1900_v0 }
 0x5c6   :  { %1722 = vmatpush3.msra.mxu0 %v1986_v2 }
 0x5c7   :  { %1723 = vmatprep.subr.mxu0 %v1900_v0 }
 0x5c8   :  { %1724 = vmatpush3.msra.mxu0 %v1995_v7 }
 0x5c9   :  { %1739 = vmatprep.subr.mxu0 %v1900_v0 }
 0x681   :  { %v845_v38 = vpop.f32.mrf.mxu0 }
 0x682   :  { %v849_v39 = vadd.f32 %v845_v38, %v766_v37 }
 0x683   :  { %v1705_v40 = vpop.f32.mrf.mxu0 }
 0x684   :  { %1805 = vtanh.f32 %v849_v39  ;;  %v1608_v42 = vmul.f32 -1.442695, %v849_v39 }
 0x686   :  { %1807 = vpow2.f32 %v1608_v42 }
 0x691   :  { %v1806_v41 = vpop.eup %1805 }
 0x692   :  { %859 = vrot.lane.b32.xlu0 %v1806_v41, %s1903_s3 }
 0x693   :  { %v1808_v43 = vpop.eup %1807 }
 0x694   :  { %v853_v44 = vadd.f32 1.0, %v1808_v43 }
 0x696   :  { %1809 = vrcp.f32 %v853_v44 }
 0x6a3   :  { %v1810_v45 = vpop.eup %1809 }
 0x6a4   :  { %v857_v48 = vmul.f32 %v1810_v45, %v759_v31 }
 0x704   :  { %v860_v46 = vpop.permute.xlu0 %859 }
 0x705   :  { %v862_v47 = vmul.f32 %v1810_v45, %v860_v46 }
 0x707   :  { %864 = vrot.lane.b32.xlu1 %v862_v47, %s1903_s3 }
 0x779   :  { %v865_v49 = vpop.permute.xlu1 %864 }
 0x77a   :  { %v867_v50 = vadd.f32 %v865_v49, %v857_v48 }
 0x77c   :  { %1811 = vtanh.f32 %v867_v50 }
 0x789   :  { %v1812_v51 = vpop.eup %1811 }
 0x78a   :  { %870 = vrot.lane.b32.xlu0 %v1812_v51, %s1903_s3  ;;  %v1198_v51 = vld [vmem:[#allocation2 + $0xc] sm:$0x3] }
 0x7fc   :  { %v871_v52 = vpop.permute.xlu0 %870 }
 0x7fd   :  { %v873_v53 = vmul.f32 %v1810_v45, %v871_v52 }
 0x7ff   :  { %v882_v54 = vrot.slane %v873_v53, %v2023_v29 }
 0x801   :  { %883 = vrot.lane.b32.xlu1 %v882_v54, %s1899_s9 }
 0x873   :  { %v884_v55 = vpop.permute.xlu1 %883 }
 0x874   :  { %1715 = vmatmul.mubr.msk.f32.vlgmr.msra.gmra.mxu1 %vm559_vm1, %v884_v55 }
 0x875   :  { %1729 = vmatpush3.msra.mxu1 %v1968_v5  ;;  %1736 = vmatprep.mubr.msk.f32.mxu1 %vm1901_vm0, %v1900_v0 }
 0x876   :  { %1730 = vmatprep.subr.mxu1 %v1900_v0 }
 0x877   :  { %1731 = vmatpush3.msra.mxu1 %v1976_v6 }
 0x878   :  { %1732 = vmatprep.subr.mxu1 %v1900_v0 }
 0x879   :  { %1733 = vmatpush3.msra.mxu1 %v1986_v2 }
 0x87a   :  { %1734 = vmatprep.subr.mxu1 %v1900_v0 }
 0x87b   :  { %1735 = vmatpush3.msra.mxu1 %v1995_v7 }
 0x87c   :  { %1750 = vmatprep.subr.mxu1 %v1900_v0 }
 0x934   :  { %v953_v57 = vpop.f32.mrf.mxu1 }
 0x935   :  { %v957_v58 = vadd.f32 %v953_v57, %v874_v56 }
 0x936   :  { %v1716_v59 = vpop.f32.mrf.mxu1 }
 0x937   :  { %1813 = vtanh.f32 %v957_v58  ;;  %v1610_v61 = vmul.f32 -1.442695, %v957_v58 }
 0x939   :  { %1815 = vpow2.f32 %v1610_v61 }
 0x944   :  { %v1814_v60 = vpop.eup %1813 }
 0x945   :  { %967 = vrot.lane.b32.xlu0 %v1814_v60, %s1903_s3 }
 0x946   :  { %v1816_v62 = vpop.eup %1815 }
 0x947   :  { %v961_v63 = vadd.f32 1.0, %v1816_v62 }
 0x949   :  { %1817 = vrcp.f32 %v961_v63 }
 0x956   :  { %v1818_v1 = vpop.eup %1817 }
 0x957   :  { %v965_v8 = vmul.f32 %v1818_v1, %v867_v50 }
 0x9b7   :  { %v968_v3 = vpop.permute.xlu0 %967 }
 0x9b8   :  { %v970_v4 = vmul.f32 %v1818_v1, %v968_v3 }
 0x9ba   :  { %972 = vrot.lane.b32.xlu1 %v970_v4, %s1903_s3 }
 0xa2c   :  { %v973_v9 = vpop.permute.xlu1 %972 }
 0xa2d   :  { %v975_v10 = vadd.f32 %v973_v9, %v965_v8 }
 0xa2f   :  { %1819 = vtanh.f32 %v975_v10 }
 0xa3c   :  { %v1820_v11 = vpop.eup %1819 }
 0xa3d   :  { %978 = vrot.lane.b32.xlu0 %v1820_v11, %s1903_s3  ;;  %v1306_v11 = vld [vmem:[#allocation2 + $0xe] sm:$0x3] }
 0xaaf   :  { %v979_v12 = vpop.permute.xlu0 %978 }
 0xab0   :  { %v981_v13 = vmul.f32 %v1818_v1, %v979_v12 }
 0xab2   :  { %v990_v14 = vrot.slane %v981_v13, %v2023_v29 }
 0xab4   :  { %991 = vrot.lane.b32.xlu1 %v990_v14, %s1899_s9 }
 0xb26   :  { %v992_v15 = vpop.permute.xlu1 %991 }
 0xb27   :  { %1726 = vmatmul.mubr.msk.f32.vlgmr.msra.gmra.mxu0 %vm559_vm1, %v992_v15 }
 0xb28   :  { %1740 = vmatpush3.msra.mxu0 %v1968_v5  ;;  %1747 = vmatprep.mubr.msk.f32.mxu0 %vm1901_vm0, %v1900_v0 }
 0xb29   :  { %1741 = vmatprep.subr.mxu0 %v1900_v0 }
 0xb2a   :  { %1742 = vmatpush3.msra.mxu0 %v1976_v6 }
 0xb2b   :  { %1743 = vmatprep.subr.mxu0 %v1900_v0 }
 0xb2c   :  { %1744 = vmatpush3.msra.mxu0 %v1986_v2 }
 0xb2d   :  { %1745 = vmatprep.subr.mxu0 %v1900_v0 }
 0xb2e   :  { %1746 = vmatpush3.msra.mxu0 %v1995_v7 }
 0xb2f   :  { %1761 = vmatprep.subr.mxu0 %v1900_v0 }
 0xbe7   :  { %v1061_v17 = vpop.f32.mrf.mxu0 }
 0xbe8   :  { %v1065_v18 = vadd.f32 %v1061_v17, %v982_v16 }
 0xbe9   :  { %v1727_v19 = vpop.f32.mrf.mxu0 }
 0xbea   :  { %1821 = vtanh.f32 %v1065_v18  ;;  %v1612_v21 = vmul.f32 -1.442695, %v1065_v18 }
 0xbec   :  { %1823 = vpow2.f32 %v1612_v21 }
 0xbf7   :  { %v1822_v20 = vpop.eup %1821 }
 0xbf8   :  { %1075 = vrot.lane.b32.xlu0 %v1822_v20, %s1903_s3 }
 0xbf9   :  { %v1824_v22 = vpop.eup %1823 }
 0xbfa   :  { %v1069_v23 = vadd.f32 1.0, %v1824_v22 }
 0xbfc   :  { %1825 = vrcp.f32 %v1069_v23 }
 0xc09   :  { %v1826_v24 = vpop.eup %1825 }
 0xc0a   :  { %v1073_v27 = vmul.f32 %v1826_v24, %v975_v10 }
 0xc6a   :  { %v1076_v25 = vpop.permute.xlu0 %1075 }
 0xc6b   :  { %v1078_v26 = vmul.f32 %v1826_v24, %v1076_v25  ;;  %v552_v25 = vld [vmem:[%s2170_s4 + $0x18] sm:$0xff] }
 0xc6d   :  { %1080 = vrot.lane.b32.xlu1 %v1078_v26, %s1903_s3  ;;  %v551_v26 = vld [vmem:[%s2170_s4 + $0x10] sm:$0xff] }
 0xcdf   :  { %v1081_v28 = vpop.permute.xlu1 %1080 }
 0xce0   :  { %v1083_v30 = vadd.f32 %v1081_v28, %v1073_v27  ;;  %v550_v27 = vld [vmem:[%s2170_s4 + $0x8] sm:$0xff]  ;;  %v549_v28 = vld [vmem:[%s2170_s4] sm:$0xff] }
 0xce2   :  { %1827 = vtanh.f32 %v1083_v30 }
 0xcef   :  { %v1828_v31 = vpop.eup %1827 }
 0xcf0   :  { %1086 = vrot.lane.b32.xlu0 %v1828_v31, %s1903_s3 }
 0xd62   :  { %v1087_v32 = vpop.permute.xlu0 %1086 }
 0xd63   :  { %v1089_v33 = vmul.f32 %v1826_v24, %v1087_v32 }
 0xd65   :  { %v1098_v34 = vrot.slane %v1089_v33, %v2023_v29 }
 0xd67   :  { %1099 = vrot.lane.b32.xlu1 %v1098_v34, %s1899_s9 }
 0xdd9   :  { %v1100_v35 = vpop.permute.xlu1 %1099 }
 0xdda   :  { %1737 = vmatmul.mubr.msk.f32.vlgmr.msra.gmra.mxu1 %vm559_vm1, %v1100_v35  ;;  %v556_v35 = vld [vmem:[%s2172_s6 + $0x10] sm:$0xf] }
 0xddb   :  { %1751 = vmatpush3.msra.mxu1 %v1968_v5  ;;  %1758 = vmatprep.mubr.msk.f32.mxu1 %vm1901_vm0, %v1900_v0 }
 0xddc   :  { %1752 = vmatprep.subr.mxu1 %v1900_v0 }
 0xddd   :  { %1753 = vmatpush3.msra.mxu1 %v1976_v6 }
 0xdde   :  { %1754 = vmatprep.subr.mxu1 %v1900_v0 }
 0xddf   :  { %1755 = vmatpush3.msra.mxu1 %v1986_v2 }
 0xde0   :  { %1756 = vmatprep.subr.mxu1 %v1900_v0 }
 0xde1   :  { %1757 = vmatpush3.msra.mxu1 %v1995_v7 }
 0xde2   :  { %1772 = vmatprep.subr.mxu1 %v1900_v0 }
 0xe9a   :  { %v1169_v37 = vpop.f32.mrf.mxu1 }
 0xe9b   :  { %v1173_v5 = vadd.f32 %v1169_v37, %v1090_v36  ;;  %v555_v36 = vld [vmem:[%s2172_s6 + $0x8] sm:$0xff]  ;;  %v1619_v37 = vld [vmem:[%s2171_s5] ss:$0 sm:$0xff] }
 0xe9c   :  { %v1738_v38 = vpop.f32.mrf.mxu1 }
 0xe9d   :  { %1829 = vtanh.f32 %v1173_v5  ;;  %v1614_v40 = vmul.f32 -1.442695, %v1173_v5 }
 0xe9f   :  { %1831 = vpow2.f32 %v1614_v40 }
 0xeaa   :  { %v1830_v39 = vpop.eup %1829 }
 0xeab   :  { %1183 = vrot.lane.b32.xlu0 %v1830_v39, %s1903_s3 }
 0xeac   :  { %v1832_v6 = vpop.eup %1831 }
 0xead   :  { %v1177_v41 = vadd.f32 1.0, %v1832_v6  ;;  %v1621_v6 = vld [vmem:[%s2173_s7] ss:$0 sm:$0xff] }
 0xeaf   :  { %1833 = vrcp.f32 %v1177_v41 }
 0xebc   :  { %v1834_v2 = vpop.eup %1833 }
 0xebd   :  { %v1181_v7 = vmul.f32 %v1834_v2, %v1083_v30 }
 0xf1d   :  { %v1184_v42 = vpop.permute.xlu0 %1183 }
 0xf1e   :  { %v1186_v43 = vmul.f32 %v1834_v2, %v1184_v42 }
 0xf20   :  { %1188 = vrot.lane.b32.xlu1 %v1186_v43, %s1903_s3 }
 0xf92   :  { %v1189_v44 = vpop.permute.xlu1 %1188 }
 0xf93   :  { %v1191_v45 = vadd.f32 %v1189_v44, %v1181_v7 }
 0xf95   :  { %1835 = vtanh.f32 %v1191_v45 }
 0xfa2   :  { %v1836_v46 = vpop.eup %1835 }
 0xfa3   :  { %1194 = vrot.lane.b32.xlu0 %v1836_v46, %s1903_s3 }
0x1015   :  { %v1195_v47 = vpop.permute.xlu0 %1194 }
0x1016   :  { %v1197_v48 = vmul.f32 %v1834_v2, %v1195_v47 }
0x1018   :  { %v1206_v49 = vrot.slane %v1197_v48, %v2023_v29 }
0x101a   :  { %1207 = vrot.lane.b32.xlu1 %v1206_v49, %s1899_s9 }
0x108c   :  { %v1208_v50 = vpop.permute.xlu1 %1207 }
0x108d   :  { %1748 = vmatmul.mubr.msk.f32.vlgmr.msra.gmra.mxu0 %vm559_vm1, %v1208_v50 }
0x108e   :  { %1769 = vmatprep.mubr.msk.f32.mxu0 %vm1901_vm0, %v1900_v0  ;;  %1762 = vmatpush3.msra.mxu0 %v552_v25 }
0x108f   :  { %1763 = vmatprep.subr.mxu0 %v1900_v0 }
0x1090   :  { %1764 = vmatpush3.msra.mxu0 %v551_v26 }
0x1091   :  { %1765 = vmatprep.subr.mxu0 %v1900_v0 }
0x1092   :  { %1766 = vmatpush3.msra.mxu0 %v550_v27 }
0x1093   :  { %1767 = vmatprep.subr.mxu0 %v1900_v0 }
0x1094   :  { %1768 = vmatpush3.msra.mxu0 %v549_v28 }
0x114d   :  { %v1277_v52 = vpop.f32.mrf.mxu0 }
0x114e   :  { %v1281_v53 = vadd.f32 %v1277_v52, %v1198_v51 }
0x114f   :  { %v1749_v54 = vpop.f32.mrf.mxu0 }
0x1150   :  { %1837 = vtanh.f32 %v1281_v53  ;;  %v1616_v56 = vmul.f32 -1.442695, %v1281_v53 }
0x1152   :  { %1839 = vpow2.f32 %v1616_v56 }
0x115d   :  { %v1838_v55 = vpop.eup %1837 }
0x115e   :  { %1291 = vrot.lane.b32.xlu0 %v1838_v55, %s1903_s3 }
0x115f   :  { %v1840_v57 = vpop.eup %1839 }
0x1160   :  { %v1285_v58 = vadd.f32 1.0, %v1840_v57 }
0x1162   :  { %1841 = vrcp.f32 %v1285_v58 }
0x116f   :  { %v1842_v59 = vpop.eup %1841 }
0x1170   :  { %v1289_v62 = vmul.f32 %v1842_v59, %v1191_v45 }
0x11d0   :  { %v1292_v60 = vpop.permute.xlu0 %1291 }
0x11d1   :  { %v1294_v61 = vmul.f32 %v1842_v59, %v1292_v60 }
0x11d3   :  { %1296 = vrot.lane.b32.xlu1 %v1294_v61, %s1903_s3 }
0x1245   :  { %v1297_v63 = vpop.permute.xlu1 %1296 }
0x1246   :  { %v1299_v1 = vadd.f32 %v1297_v63, %v1289_v62 }
0x1248   :  { %1843 = vtanh.f32 %v1299_v1 }
0x1255   :  { %v1844_v3 = vpop.eup %1843 }
0x1256   :  { %1302 = vrot.lane.b32.xlu0 %v1844_v3, %s1903_s3 }
0x12c8   :  { %v1303_v4 = vpop.permute.xlu0 %1302 }
0x12c9   :  { %v1305_v8 = vmul.f32 %v1842_v59, %v1303_v4 }
0x12cb   :  { %v1314_v9 = vrot.slane %v1305_v8, %v2023_v29 }
0x12cd   :  { %1315 = vrot.lane.b32.xlu1 %v1314_v9, %s1899_s9 }
0x133f   :  { %v1316_v10 = vpop.permute.xlu1 %1315 }
0x1340   :  { %1759 = vmatmul.mubr.msk.f32.vlgmr.msra.gmra.mxu1 %vm559_vm1, %v1316_v10 }
0x1341   :  { %1778 = vmatprep.mubr.msk.f32.mxu1 %vm1901_vm0, %v1900_v0  ;;  %1773 = vmatpush3.msk.msra.mxu1 %vm1513_vm2, %v556_v35 }
0x1342   :  { %1774 = vmatprep.subr.mxu1 %v1900_v0 }
0x1343   :  { %1775 = vmatpush3.msra.mxu1 %v555_v36 }
0x1344   :  { %1776 = vmatprep.subr.mxu1 %v1900_v0 }
0x1400   :  { %v1385_v12 = vpop.f32.mrf.mxu1 }
0x1401   :  { %v1389_v13 = vadd.f32 %v1385_v12, %v1306_v11 }
0x1402   :  { %v1760_v14 = vpop.f32.mrf.mxu1 }
0x1403   :  { %1845 = vtanh.f32 %v1389_v13  ;;  %v1618_v16 = vmul.f32 -1.442695, %v1389_v13 }
0x1405   :  { %1847 = vpow2.f32 %v1618_v16 }
0x1410   :  { %v1846_v15 = vpop.eup %1845 }
0x1411   :  { %1399 = vrot.lane.b32.xlu0 %v1846_v15, %s1903_s3 }
0x1412   :  { %v1848_v17 = vpop.eup %1847 }
0x1413   :  { %v1393_v18 = vadd.f32 1.0, %v1848_v17 }
0x1415   :  { %1849 = vrcp.f32 %v1393_v18 }
0x1422   :  { %v1850_v19 = vpop.eup %1849 }
0x1423   :  { %v1397_v22 = vmul.f32 %v1850_v19, %v1299_v1 }
0x1483   :  { %v1400_v20 = vpop.permute.xlu0 %1399 }
0x1484   :  { %v1402_v21 = vmul.f32 %v1850_v19, %v1400_v20 }
0x1486   :  { %1404 = vrot.lane.b32.xlu1 %v1402_v21, %s1903_s3 }
0x14f8   :  { %v1405_v23 = vpop.permute.xlu1 %1404 }
0x14f9   :  { %v1407_v24 = vadd.f32 %v1405_v23, %v1397_v22 }
0x14fb   :  { %1851 = vtanh.f32 %v1407_v24 }
0x1508   :  { %v1852_v30 = vpop.eup %1851 }
0x1509   :  { %1410 = vrot.lane.b32.xlu0 %v1852_v30, %s1903_s3 }
0x157b   :  { %v1411_v31 = vpop.permute.xlu0 %1410 }
0x157c   :  { %v1413_v32 = vmul.f32 %v1850_v19, %v1411_v31 }
0x157e   :  { %v1427_v33 = vrot.slane %v1413_v32, %v2023_v29  ;;  %v554_v29 = vld [vmem:[%s2172_s6] sm:$0xff]  ;;  %s1873_s6 = scalar_lea.vmem %s1596_s15, 32 }
0x157f   :  { %1777 = vmatpush3.msra.mxu1 %v554_v29  ;;  %p1874_p5 = scmp.ne.s32.totalorder %s1596_s15, %s1873_s6  ;;  %p1879_p7 = scmp.lt.s32.totalorder %s1873_s6, %s1873_s6 }
0x1580   :  { %1428 = vrot.lane.b32.xlu1 %v1427_v33, %s1899_s9 }
0x1581   :  { %p1880_p8 = por %p1879_p7, %p1878_p6 }
0x1583   :  { %p1881_p9 = pnand %p1880_p8, %p1874_p5 }
0x15f2   :  { %v1429_v34 = vpop.permute.xlu1 %1428 }
0x15f3   :  { %1770 = vmatmul.mubr.msk.f32.vlgmr.msra.gmra.mxu0 %vm559_vm1, %v1429_v34 }
0x16b3   :  { %v1498_v5 = vpop.f32.mrf.mxu0 }
0x16b4   :  { %v1499_v38 = vadd.f32 %v1619_v37, %v1498_v5 }
0x16b5   :  { %v1771_v39 = vpop.f32.mrf.mxu0 }
0x16b6   :  { %v1502_v40 = vmax.f32 %v1499_v38, 0.0 }
0x16b8   :  { %1779 = vmatmul.mubr.msk.f32.vlgmr.msra.gmra.mxu1 %vm1509_vm3, %v1502_v40 }
0x1778   :  { %v1583_v0 = vpop.f32.mrf.mxu1 }
0x1779   :  { %v1584_v41 = vadd.f32 %v1621_v6, %v1583_v0 }
0x177a   :  { %v1780_v2 = vpop.f32.mrf.mxu1 }
0x177b   :  { %1588 = vst.msk [vmem:[#allocation6] sm:$0x3] %vm1587_vm4, %v1584_v41 }
0x177c   :  { %1884 = shalt.err (!%p1881_p9)
}
0x177d   :  { %1598 = dma.vmem_to_hbm [thread:$0]  %s1596_s15, 32, %s2174_s8, [#allocation5]  }
0x177e   :  { %1895 = dma.done.wait [#allocation5], 32  }
0x177f   :  { %1896 = vsyncadd [#allocation5], 4294967264 }
0x1780   :  { %1602 = vsyncpa [#allocation4], 1 }
0x1781   :  { %1603 = vsyncpa [#allocation5], 1 }

</bundles_post_ra>
